<compile_context>
chip_gen: v6e
topology: v6e:2x2x1
jax: 0.10.0
libtpu: 0.0.40
codegen_flags: <defaults>
</compile_context>

<pallas_src>
import math
import numpy as np

import jax
import jax.numpy as jnp
from jax.experimental import pallas as pl
from jax.experimental.pallas import tpu as pltpu


def _dft2_stacked(xcat_ref, mcat_ref, f_ref):
    """2-D unnormalized DFT of the planar complex field stored stacked in xcat.

    xcat_ref : (N, 2N) bf16 VMEM scratch holding [Xr | Xi]
    mcat_ref : (2N, N) bf16 VMEM scratch for the intermediate [Mr ; Mi]
    f_ref    : (2, N, N) bf16 DFT matrix planes (Fr, Fi), F symmetric
    Returns (Yr, Yi) as f32 register values, Y = F @ X @ F.
    """
    N = xcat_ref.shape[0]
    dot = lambda a, b: jnp.dot(a, b, preferred_element_type=jnp.float32)

    # Stage 1: M = F @ X, as two 128x128x256 real matmuls.
    x = xcat_ref[...]                                     # (N, 2N) [Xr | Xi]
    p1 = dot(f_ref[0], x)                                 # [Fr@Xr | Fr@Xi]
    p2 = dot(f_ref[1], x)                                 # [Fi@Xr | Fi@Xi]
    # Mr = Fr@Xr - Fi@Xi ; Mi = Fr@Xi + Fi@Xr  (written stacked, no copy)
    mcat_ref[:N, :] = (p1[:, :N] - p2[:, N:]).astype(jnp.bfloat16)
    mcat_ref[N:, :] = (p1[:, N:] + p2[:, :N]).astype(jnp.bfloat16)

    # Stage 2: Y = M @ F, as two 256x128x128 real matmuls.
    m = mcat_ref[...]                                     # (2N, N) [Mr ; Mi]
    q1 = dot(m, f_ref[0])                                 # [Mr@Fr ; Mi@Fr]
    q2 = dot(m, f_ref[1])                                 # [Mr@Fi ; Mi@Fi]
    yr = q1[:N, :] - q2[N:, :]                            # Mr@Fr - Mi@Fi
    yi = q2[:N, :] + q1[N:, :]                            # Mr@Fi + Mi@Fr
    return yr, yi


def _two_step_prop_kernel(
    uin_ref,                 # (2, N, N) f32   current batch element (planar re/im)
    c1_ref,                  # (2, N, N) bf16  input chirp exp(i k r1^2 / 2Dz1)
    mid_ref,                 # (2, N, N) bf16  folded i*(-wvl*Dz1)*d1^2 * q1 * c2
    fin_ref,                 # (2, N, N) f32   folded i*(-wvl*Dz2)*d1a^2 * q2
    f_ref,                   # (2, N, N) bf16  DFT matrix planes (Fr, Fi)
    out_ref,                 # (2, N, N) f32
    xcat_ref,                # (N, 2N) bf16 scratch: stacked [Xr | Xi]
    mcat_ref,                # (2N, N) bf16 scratch: stacked [Mr ; Mi]
):
    N = out_ref.shape[-1]

    # ---- t = Uin * c1 (elementwise complex, bf16), stored stacked [tr | ti] ----
    ur = uin_ref[0].astype(jnp.bfloat16)
    ui = uin_ref[1].astype(jnp.bfloat16)
    xcat_ref[:, :N] = ur * c1_ref[0] - ui * c1_ref[1]
    xcat_ref[:, N:] = ur * c1_ref[1] + ui * c1_ref[0]

    # ---- Y = FFT2(t)   (d1^2 scale folded into `mid`) ----
    yr, yi = _dft2_stacked(xcat_ref, mcat_ref, f_ref)

    # ---- t2 = Y * mid (bf16), stored stacked for the second DFT ----
    ybr = yr.astype(jnp.bfloat16)
    ybi = yi.astype(jnp.bfloat16)
    xcat_ref[:, :N] = ybr * mid_ref[0] - ybi * mid_ref[1]
    xcat_ref[:, N:] = ybr * mid_ref[1] + ybi * mid_ref[0]

    # ---- Y2 = FFT2(t2)  (d1a^2 scale folded into `fin`) ----
    y2r, y2i = _dft2_stacked(xcat_ref, mcat_ref, f_ref)

    # ---- Uout = Y2 * fin (f32) ----
    out_ref[0] = y2r * fin_ref[0] - y2i * fin_ref[1]
    out_ref[1] = y2r * fin_ref[1] + y2i * fin_ref[0]


def make_two_step_prop_params(N, wvl, d1, d2, Dz):
    """Deterministic parameter construction mirroring TwoStepProp.__init__,
    with all input-independent elementwise factors folded host-side."""
    k = 2.0 * math.pi / wvl
    tmp = np.arange(-(N // 2), N // 2, dtype=np.float64)  # torch.arange(-N//2, N//2)

    m = d2 / d1
    Dz1 = Dz / (1.0 - m)
    Dz2 = Dz - Dz1
    d1a = wvl * abs(Dz1) / (N * d1)

    r1sq = (tmp * d1)[:, None] ** 2 + (tmp * d1)[None, :] ** 2      # x1^2 + y1^2
    r1asq = (tmp * d1a)[:, None] ** 2 + (tmp * d1a)[None, :] ** 2   # x1a^2 + y1a^2
    r2sq = (tmp * d2)[:, None] ** 2 + (tmp * d2)[None, :] ** 2      # x2^2 + y2^2

    # input chirp (multiplies the data-dependent Uin -> separate plane, bf16)
    ph1 = k / (2.0 * Dz1) * r1sq
    c1 = np.stack([np.cos(ph1), np.sin(ph1)], axis=0)

    # mid = i*(-wvl*Dz1)*d1^2 * exp(i*(k/(2Dz1)+k/(2Dz2))*r1a^2)
    ph_mid = (k / (2.0 * Dz1) + k / (2.0 * Dz2)) * r1asq
    a_mid = -wvl * Dz1 * d1 * d1
    mid = np.stack([-a_mid * np.sin(ph_mid),      # i*A*e^{i phi} = -A sin + i A cos
                    a_mid * np.cos(ph_mid)], axis=0)

    # fin = i*(-wvl*Dz2)*d1a^2 * exp(i*k/(2Dz2)*r2^2)   (stays f32: feeds f32 output)
    ph_fin = k / (2.0 * Dz2) * r2sq
    a_fin = -wvl * Dz2 * d1a * d1a
    fin = np.stack([-a_fin * np.sin(ph_fin),
                    a_fin * np.cos(ph_fin)], axis=0)

    # DFT matrix F[u,m] = exp(-2*pi*i*u*m/N), exponent reduced mod N exactly.
    idx = np.arange(N)
    ang = -2.0 * np.pi * ((np.outer(idx, idx) % N).astype(np.float64)) / N
    f = np.stack([np.cos(ang), np.sin(ang)], axis=0)

    return {
        "c1": jnp.asarray(c1, jnp.bfloat16),
        "mid": jnp.asarray(mid, jnp.bfloat16),
        "fin": jnp.asarray(fin, jnp.float32),
        "f": jnp.asarray(f, jnp.bfloat16),
    }


def two_step_prop_planar(uin_planar, N, wvl, d1, d2, Dz, params=None):
    """Preferred entry point.  uin_planar: (B, 2, N, N) f32 (real/imag planes).
    Returns (B, 2, N, N) f32 — no wrapper-side relayout at all."""
    if params is None:
        params = make_two_step_prop_params(N, wvl, d1, d2, Dz)
    uin_planar = jnp.asarray(uin_planar, jnp.float32)
    B = uin_planar.shape[0]

    batch_spec = pl.BlockSpec((None, 2, N, N), lambda b: (b, 0, 0, 0))   # batch squeezed
    const_spec = pl.BlockSpec((2, N, N), lambda b: (0, 0, 0))            # VMEM-resident

    # 16 real bf16 matmuls of N^3 per batch element (4 complex matmuls, 4-mult each).
    flops = 32 * int(B) * N * N * N
    bytes_accessed = (3 * 2 * N * N * 2) + (2 * N * N * 4) + int(B) * 16 * N * N

    out = pl.pallas_call(
        _two_step_prop_kernel,
        out_shape=jax.ShapeDtypeStruct((B, 2, N, N), jnp.float32),
        grid=(B,),
        in_specs=[batch_spec, const_spec, const_spec, const_spec, const_spec],
        out_specs=batch_spec,
        scratch_shapes=[
            pltpu.VMEM((N, 2 * N), jnp.bfloat16),   # [Xr | Xi]
            pltpu.VMEM((2 * N, N), jnp.bfloat16),   # [Mr ; Mi]
        ],
        compiler_params=pltpu.CompilerParams(dimension_semantics=("parallel",)),
        cost_estimate=pl.CostEstimate(
            flops=flops, transcendentals=0, bytes_accessed=bytes_accessed),
    )(uin_planar, params["c1"], params["mid"], params["fin"], params["f"])
    return out


def two_step_prop(uin, N, wvl, d1, d2, Dz, params=None):
    """Torch-module-compatible wrapper: uin (N, N, 2) or (B, N, N, 2) f32.
    A single transpose each way around the planar kernel (no de-interleave +
    interleave of two separate arrays)."""
    uin = jnp.asarray(uin, jnp.float32)
    single = (uin.ndim == 3)
    if single:
        uin = uin[None]
    planar = jnp.moveaxis(uin, -1, 1)                          # (B, 2, N, N)
    out_planar = two_step_prop_planar(planar, N, wvl, d1, d2, Dz, params)
    out = jnp.moveaxis(out_planar, 1, -1)                      # (B, N, N, 2)
    if single:
        out = out[0]
    return out


def two_step_prop_reference(uin, N, wvl, d1, d2, Dz):
    """Pure-JAX reference following the torch forward step by step (unfolded,
    jnp.fft.fft2), for validation.  uin: (..., N, N, 2)."""
    k = 2.0 * math.pi / wvl
    tmp = np.arange(-(N // 2), N // 2, dtype=np.float64)
    m = d2 / d1
    Dz1 = Dz / (1.0 - m)
    Dz2 = Dz - Dz1
    d1a = wvl * abs(Dz1) / (N * d1)

    r1sq = (tmp * d1)[:, None] ** 2 + (tmp * d1)[None, :] ** 2
    r1asq = (tmp * d1a)[:, None] ** 2 + (tmp * d1a)[None, :] ** 2
    r2sq = (tmp * d2)[:, None] ** 2 + (tmp * d2)[None, :] ** 2

    c1 = jnp.asarray(np.exp(1j * k / (2.0 * Dz1) * r1sq), jnp.complex64)
    q1 = jnp.asarray(np.exp(1j * k / (2.0 * Dz1) * r1asq), jnp.complex64)
    c2 = jnp.asarray(np.exp(1j * k / (2.0 * Dz2) * r1asq), jnp.complex64)
    q2 = jnp.asarray(np.exp(1j * k / (2.0 * Dz2) * r2sq), jnp.complex64)

    u = uin[..., 0].astype(jnp.complex64) + 1j * uin[..., 1].astype(jnp.complex64)
    t = u * c1
    y = jnp.fft.fft2(t) * (d1 * d1)                    # Ft2 with delta = d1
    itm = (1j * (-wvl * Dz1)) * q1 * y                 # Uitm
    t2 = itm * c2
    y2 = jnp.fft.fft2(t2) * (d1a * d1a)                # Ft2 with delta = d1a
    out = (1j * (-wvl * Dz2)) * q2 * y2                # Uout
    return jnp.stack([out.real, out.imag], axis=-1)


if __name__ == "__main__":
    # small, MXU/lane-friendly problem size; batch of 2 fields
    N = 128
    B = 2
    wvl = 0.5e-6
    d1 = 1e-3
    d2 = 2e-3
    Dz = 0.1

    key = jax.random.PRNGKey(0)
    k_re, k_im = jax.random.split(key)
    re = jax.random.normal(k_re, (B, N, N), dtype=jnp.float32)
    im = jax.random.normal(k_im, (B, N, N), dtype=jnp.float32)

    uin_planar = jnp.stack([re, im], axis=1)         # (B, 2, N, N)  preferred layout
    uin_interleaved = jnp.stack([re, im], axis=-1)   # (B, N, N, 2)  torch-compatible

    params = make_two_step_prop_params(N, wvl, d1, d2, Dz)

    out_planar = jax.block_until_ready(
        two_step_prop_planar(uin_planar, N, wvl, d1, d2, Dz, params))
    ref = jax.block_until_ready(
        two_step_prop_reference(uin_interleaved, N, wvl, d1, d2, Dz))
    ref_planar = jnp.moveaxis(ref, -1, 1)

    scale = float(jnp.max(jnp.abs(ref))) + 1e-30
    err = float(jnp.max(jnp.abs(out_planar - ref_planar))) / scale
    assert err < 5e-2, f"planar mismatch: rel err {err}"

    # torch-module-compatible (N, N, 2) single-field path
    out1 = jax.block_until_ready(
        two_step_prop(uin_interleaved[0], N, wvl, d1, d2, Dz, params))
    assert out1.shape == (N, N, 2)
    err1 = float(jnp.max(jnp.abs(out1 - ref[0]))) / scale
    assert err1 < 5e-2, f"single-field mismatch: rel err {err1}"

    print("KERNEL_OK")
</pallas_src>

<mosaic_0001>
module attributes {stable_mosaic.version = 11 : i64} {
  func.func @_two_step_prop_kernel(%arg0: i32, %arg1: memref<1x2x128x128xf32, #tpu.memory_space<vmem>>, %arg2: memref<2x128x128xbf16, #tpu.memory_space<vmem>>, %arg3: memref<2x128x128xbf16, #tpu.memory_space<vmem>>, %arg4: memref<2x128x128xf32, #tpu.memory_space<vmem>>, %arg5: memref<2x128x128xbf16, #tpu.memory_space<vmem>>, %arg6: memref<1x2x128x128xf32, #tpu.memory_space<vmem>>, %arg7: memref<128x256xbf16, #tpu.memory_space<vmem>>, %arg8: memref<256x128xbf16, #tpu.memory_space<vmem>>) attributes {dimension_semantics = [#tpu.dimension_semantics<parallel>], iteration_bounds = array<i64: 2>, scalar_prefetch = 0 : i64, scratch_operands = 2 : i64, tpu.core_type = #tpu.core_type<tc>, window_params = [{transform_indices = @transform_0, window_bounds = array<i64: 1, 2, 128, 128>}, {pipeline_mode = #tpu.pipeline_mode<synchronous>, transform_indices = @transform_1, window_bounds = array<i64: 2, 128, 128>}, {pipeline_mode = #tpu.pipeline_mode<synchronous>, transform_indices = @transform_2, window_bounds = array<i64: 2, 128, 128>}, {pipeline_mode = #tpu.pipeline_mode<synchronous>, transform_indices = @transform_3, window_bounds = array<i64: 2, 128, 128>}, {pipeline_mode = #tpu.pipeline_mode<synchronous>, transform_indices = @transform_4, window_bounds = array<i64: 2, 128, 128>}, {transform_indices = @transform_5, window_bounds = array<i64: 1, 2, 128, 128>}]} {
    %c0 = arith.constant 0 : index
    %c0_0 = arith.constant 0 : index
    %c0_1 = arith.constant 0 : index
    %c0_2 = arith.constant 0 : index
    %0 = vector.load %arg1[%c0, %c0_0, %c0_1, %c0_2] : memref<1x2x128x128xf32, #tpu.memory_space<vmem>>, vector<1x1x128x128xf32>
    %1 = vector.shape_cast %0 : vector<1x1x128x128xf32> to vector<128x128xf32>
    %2 = arith.truncf %1 : vector<128x128xf32> to vector<128x128xbf16>
    %c0_3 = arith.constant 0 : index
    %c1 = arith.constant 1 : index
    %c0_4 = arith.constant 0 : index
    %c0_5 = arith.constant 0 : index
    %3 = vector.load %arg1[%c0_3, %c1, %c0_4, %c0_5] : memref<1x2x128x128xf32, #tpu.memory_space<vmem>>, vector<1x1x128x128xf32>
    %4 = vector.shape_cast %3 : vector<1x1x128x128xf32> to vector<128x128xf32>
    %5 = arith.truncf %4 : vector<128x128xf32> to vector<128x128xbf16>
    %c0_6 = arith.constant 0 : index
    %c0_7 = arith.constant 0 : index
    %c0_8 = arith.constant 0 : index
    %6 = vector.load %arg2[%c0_6, %c0_7, %c0_8] : memref<2x128x128xbf16, #tpu.memory_space<vmem>>, vector<1x128x128xbf16>
    %7 = vector.shape_cast %6 : vector<1x128x128xbf16> to vector<128x128xbf16>
    %8 = arith.mulf %2, %7 : vector<128x128xbf16>
    %c1_9 = arith.constant 1 : index
    %c0_10 = arith.constant 0 : index
    %c0_11 = arith.constant 0 : index
    %9 = vector.load %arg2[%c1_9, %c0_10, %c0_11] : memref<2x128x128xbf16, #tpu.memory_space<vmem>>, vector<1x128x128xbf16>
    %10 = vector.shape_cast %9 : vector<1x128x128xbf16> to vector<128x128xbf16>
    %11 = arith.mulf %5, %10 : vector<128x128xbf16>
    %12 = arith.subf %8, %11 : vector<128x128xbf16>
    %c0_12 = arith.constant 0 : index
    %c0_13 = arith.constant 0 : index
    %13 = vector.load %arg7[%c0_12, %c0_13] : memref<128x256xbf16, #tpu.memory_space<vmem>>, vector<128x128xbf16>
    tpu.vector_store %arg7[%c0_12, %c0_13], %12 {strides = array<i32>} : memref<128x256xbf16, #tpu.memory_space<vmem>>, vector<128x128xbf16>,
    %c1_14 = arith.constant 1 : index
    %c0_15 = arith.constant 0 : index
    %c0_16 = arith.constant 0 : index
    %14 = vector.load %arg2[%c1_14, %c0_15, %c0_16] : memref<2x128x128xbf16, #tpu.memory_space<vmem>>, vector<1x128x128xbf16>
    %15 = vector.shape_cast %14 : vector<1x128x128xbf16> to vector<128x128xbf16>
    %16 = arith.mulf %2, %15 : vector<128x128xbf16>
    %c0_17 = arith.constant 0 : index
    %c0_18 = arith.constant 0 : index
    %c0_19 = arith.constant 0 : index
    %17 = vector.load %arg2[%c0_17, %c0_18, %c0_19] : memref<2x128x128xbf16, #tpu.memory_space<vmem>>, vector<1x128x128xbf16>
    %18 = vector.shape_cast %17 : vector<1x128x128xbf16> to vector<128x128xbf16>
    %19 = arith.mulf %5, %18 : vector<128x128xbf16>
    %20 = arith.addf %16, %19 : vector<128x128xbf16>
    %c0_20 = arith.constant 0 : index
    %c128 = arith.constant 128 : index
    %21 = vector.load %arg7[%c0_20, %c128] : memref<128x256xbf16, #tpu.memory_space<vmem>>, vector<128x128xbf16>
    tpu.vector_store %arg7[%c0_20, %c128], %20 {strides = array<i32>} : memref<128x256xbf16, #tpu.memory_space<vmem>>, vector<128x128xbf16>,
    %c0_21 = arith.constant 0 : index
    %c0_22 = arith.constant 0 : index
    %22 = vector.load %arg7[%c0_21, %c0_22] : memref<128x256xbf16, #tpu.memory_space<vmem>>, vector<128x256xbf16>
    %c0_23 = arith.constant 0 : index
    %c0_24 = arith.constant 0 : index
    %c0_25 = arith.constant 0 : index
    %23 = vector.load %arg5[%c0_23, %c0_24, %c0_25] : memref<2x128x128xbf16, #tpu.memory_space<vmem>>, vector<1x128x128xbf16>
    %24 = vector.shape_cast %23 : vector<1x128x128xbf16> to vector<128x128xbf16>
    %cst = arith.constant dense<0.000000e+00> : vector<128x256xf32>
    %25 = tpu.matmul %24, %22, %cst {dimension_numbers = #tpu.dot_dimension_numbers<[1], [0], [0], [1], [0, 0, 1, 1], [], []>} : vector<128x128xbf16>, vector<128x256xbf16>, vector<128x256xf32> -> vector<128x256xf32>
    %c1_26 = arith.constant 1 : index
    %c0_27 = arith.constant 0 : index
    %c0_28 = arith.constant 0 : index
    %26 = vector.load %arg5[%c1_26, %c0_27, %c0_28] : memref<2x128x128xbf16, #tpu.memory_space<vmem>>, vector<1x128x128xbf16>
    %27 = vector.shape_cast %26 : vector<1x128x128xbf16> to vector<128x128xbf16>
    %cst_29 = arith.constant dense<0.000000e+00> : vector<128x256xf32>
    %28 = tpu.matmul %27, %22, %cst_29 {dimension_numbers = #tpu.dot_dimension_numbers<[1], [0], [0], [1], [0, 0, 1, 1], [], []>} : vector<128x128xbf16>, vector<128x256xbf16>, vector<128x256xf32> -> vector<128x256xf32>
    %29 = vector.extract_strided_slice %25 {offsets = [0, 0], sizes = [128, 128], strides = [1, 1]} : vector<128x256xf32> to vector<128x128xf32>
    %30 = vector.extract_strided_slice %28 {offsets = [0, 128], sizes = [128, 128], strides = [1, 1]} : vector<128x256xf32> to vector<128x128xf32>
    %31 = arith.subf %29, %30 : vector<128x128xf32>
    %32 = arith.truncf %31 : vector<128x128xf32> to vector<128x128xbf16>
    %c0_30 = arith.constant 0 : index
    %c0_31 = arith.constant 0 : index
    %33 = vector.load %arg8[%c0_30, %c0_31] : memref<256x128xbf16, #tpu.memory_space<vmem>>, vector<128x128xbf16>
    tpu.vector_store %arg8[%c0_30, %c0_31], %32 {strides = array<i32>} : memref<256x128xbf16, #tpu.memory_space<vmem>>, vector<128x128xbf16>,
    %34 = vector.extract_strided_slice %25 {offsets = [0, 128], sizes = [128, 128], strides = [1, 1]} : vector<128x256xf32> to vector<128x128xf32>
    %35 = vector.extract_strided_slice %28 {offsets = [0, 0], sizes = [128, 128], strides = [1, 1]} : vector<128x256xf32> to vector<128x128xf32>
    %36 = arith.addf %34, %35 : vector<128x128xf32>
    %37 = arith.truncf %36 : vector<128x128xf32> to vector<128x128xbf16>
    %c128_32 = arith.constant 128 : index
    %c0_33 = arith.constant 0 : index
    %38 = vector.load %arg8[%c128_32, %c0_33] : memref<256x128xbf16, #tpu.memory_space<vmem>>, vector<128x128xbf16>
    tpu.vector_store %arg8[%c128_32, %c0_33], %37 {strides = array<i32>} : memref<256x128xbf16, #tpu.memory_space<vmem>>, vector<128x128xbf16>,
    %c0_34 = arith.constant 0 : index
    %c0_35 = arith.constant 0 : index
    %39 = vector.load %arg8[%c0_34, %c0_35] : memref<256x128xbf16, #tpu.memory_space<vmem>>, vector<256x128xbf16>
    %c0_36 = arith.constant 0 : index
    %c0_37 = arith.constant 0 : index
    %c0_38 = arith.constant 0 : index
    %40 = vector.load %arg5[%c0_36, %c0_37, %c0_38] : memref<2x128x128xbf16, #tpu.memory_space<vmem>>, vector<1x128x128xbf16>
    %41 = vector.shape_cast %40 : vector<1x128x128xbf16> to vector<128x128xbf16>
    %cst_39 = arith.constant dense<0.000000e+00> : vector<256x128xf32>
    %42 = tpu.matmul %39, %41, %cst_39 {dimension_numbers = #tpu.dot_dimension_numbers<[1], [0], [0], [1], [0, 0, 1, 1], [], []>} : vector<256x128xbf16>, vector<128x128xbf16>, vector<256x128xf32> -> vector<256x128xf32>
    %c1_40 = arith.constant 1 : index
    %c0_41 = arith.constant 0 : index
    %c0_42 = arith.constant 0 : index
    %43 = vector.load %arg5[%c1_40, %c0_41, %c0_42] : memref<2x128x128xbf16, #tpu.memory_space<vmem>>, vector<1x128x128xbf16>
    %44 = vector.shape_cast %43 : vector<1x128x128xbf16> to vector<128x128xbf16>
    %cst_43 = arith.constant dense<0.000000e+00> : vector<256x128xf32>
    %45 = tpu.matmul %39, %44, %cst_43 {dimension_numbers = #tpu.dot_dimension_numbers<[1], [0], [0], [1], [0, 0, 1, 1], [], []>} : vector<256x128xbf16>, vector<128x128xbf16>, vector<256x128xf32> -> vector<256x128xf32>
    %46 = vector.extract_strided_slice %42 {offsets = [0, 0], sizes = [128, 128], strides = [1, 1]} : vector<256x128xf32> to vector<128x128xf32>
    %47 = vector.extract_strided_slice %45 {offsets = [128, 0], sizes = [128, 128], strides = [1, 1]} : vector<256x128xf32> to vector<128x128xf32>
    %48 = arith.subf %46, %47 : vector<128x128xf32>
    %49 = vector.extract_strided_slice %45 {offsets = [0, 0], sizes = [128, 128], strides = [1, 1]} : vector<256x128xf32> to vector<128x128xf32>
    %50 = vector.extract_strided_slice %42 {offsets = [128, 0], sizes = [128, 128], strides = [1, 1]} : vector<256x128xf32> to vector<128x128xf32>
    %51 = arith.addf %49, %50 : vector<128x128xf32>
    %52 = arith.truncf %48 : vector<128x128xf32> to vector<128x128xbf16>
    %53 = arith.truncf %51 : vector<128x128xf32> to vector<128x128xbf16>
    %c0_44 = arith.constant 0 : index
    %c0_45 = arith.constant 0 : index
    %c0_46 = arith.constant 0 : index
    %54 = vector.load %arg3[%c0_44, %c0_45, %c0_46] : memref<2x128x128xbf16, #tpu.memory_space<vmem>>, vector<1x128x128xbf16>
    %55 = vector.shape_cast %54 : vector<1x128x128xbf16> to vector<128x128xbf16>
    %56 = arith.mulf %52, %55 : vector<128x128xbf16>
    %c1_47 = arith.constant 1 : index
    %c0_48 = arith.constant 0 : index
    %c0_49 = arith.constant 0 : index
    %57 = vector.load %arg3[%c1_47, %c0_48, %c0_49] : memref<2x128x128xbf16, #tpu.memory_space<vmem>>, vector<1x128x128xbf16>
    %58 = vector.shape_cast %57 : vector<1x128x128xbf16> to vector<128x128xbf16>
    %59 = arith.mulf %53, %58 : vector<128x128xbf16>
    %60 = arith.subf %56, %59 : vector<128x128xbf16>
    %c0_50 = arith.constant 0 : index
    %c0_51 = arith.constant 0 : index
    %61 = vector.load %arg7[%c0_50, %c0_51] : memref<128x256xbf16, #tpu.memory_space<vmem>>, vector<128x128xbf16>
    tpu.vector_store %arg7[%c0_50, %c0_51], %60 {strides = array<i32>} : memref<128x256xbf16, #tpu.memory_space<vmem>>, vector<128x128xbf16>,
    %c1_52 = arith.constant 1 : index
    %c0_53 = arith.constant 0 : index
    %c0_54 = arith.constant 0 : index
    %62 = vector.load %arg3[%c1_52, %c0_53, %c0_54] : memref<2x128x128xbf16, #tpu.memory_space<vmem>>, vector<1x128x128xbf16>
    %63 = vector.shape_cast %62 : vector<1x128x128xbf16> to vector<128x128xbf16>
    %64 = arith.mulf %52, %63 : vector<128x128xbf16>
    %c0_55 = arith.constant 0 : index
    %c0_56 = arith.constant 0 : index
    %c0_57 = arith.constant 0 : index
    %65 = vector.load %arg3[%c0_55, %c0_56, %c0_57] : memref<2x128x128xbf16, #tpu.memory_space<vmem>>, vector<1x128x128xbf16>
    %66 = vector.shape_cast %65 : vector<1x128x128xbf16> to vector<128x128xbf16>
    %67 = arith.mulf %53, %66 : vector<128x128xbf16>
    %68 = arith.addf %64, %67 : vector<128x128xbf16>
    %c0_58 = arith.constant 0 : index
    %c128_59 = arith.constant 128 : index
    %69 = vector.load %arg7[%c0_58, %c128_59] : memref<128x256xbf16, #tpu.memory_space<vmem>>, vector<128x128xbf16>
    tpu.vector_store %arg7[%c0_58, %c128_59], %68 {strides = array<i32>} : memref<128x256xbf16, #tpu.memory_space<vmem>>, vector<128x128xbf16>,
    %c0_60 = arith.constant 0 : index
    %c0_61 = arith.constant 0 : index
    %70 = vector.load %arg7[%c0_60, %c0_61] : memref<128x256xbf16, #tpu.memory_space<vmem>>, vector<128x256xbf16>
    %c0_62 = arith.constant 0 : index
    %c0_63 = arith.constant 0 : index
    %c0_64 = arith.constant 0 : index
    %71 = vector.load %arg5[%c0_62, %c0_63, %c0_64] : memref<2x128x128xbf16, #tpu.memory_space<vmem>>, vector<1x128x128xbf16>
    %72 = vector.shape_cast %71 : vector<1x128x128xbf16> to vector<128x128xbf16>
    %cst_65 = arith.constant dense<0.000000e+00> : vector<128x256xf32>
    %73 = tpu.matmul %72, %70, %cst_65 {dimension_numbers = #tpu.dot_dimension_numbers<[1], [0], [0], [1], [0, 0, 1, 1], [], []>} : vector<128x128xbf16>, vector<128x256xbf16>, vector<128x256xf32> -> vector<128x256xf32>
    %c1_66 = arith.constant 1 : index
    %c0_67 = arith.constant 0 : index
    %c0_68 = arith.constant 0 : index
    %74 = vector.load %arg5[%c1_66, %c0_67, %c0_68] : memref<2x128x128xbf16, #tpu.memory_space<vmem>>, vector<1x128x128xbf16>
    %75 = vector.shape_cast %74 : vector<1x128x128xbf16> to vector<128x128xbf16>
    %cst_69 = arith.constant dense<0.000000e+00> : vector<128x256xf32>
    %76 = tpu.matmul %75, %70, %cst_69 {dimension_numbers = #tpu.dot_dimension_numbers<[1], [0], [0], [1], [0, 0, 1, 1], [], []>} : vector<128x128xbf16>, vector<128x256xbf16>, vector<128x256xf32> -> vector<128x256xf32>
    %77 = vector.extract_strided_slice %73 {offsets = [0, 0], sizes = [128, 128], strides = [1, 1]} : vector<128x256xf32> to vector<128x128xf32>
    %78 = vector.extract_strided_slice %76 {offsets = [0, 128], sizes = [128, 128], strides = [1, 1]} : vector<128x256xf32> to vector<128x128xf32>
    %79 = arith.subf %77, %78 : vector<128x128xf32>
    %80 = arith.truncf %79 : vector<128x128xf32> to vector<128x128xbf16>
    %c0_70 = arith.constant 0 : index
    %c0_71 = arith.constant 0 : index
    %81 = vector.load %arg8[%c0_70, %c0_71] : memref<256x128xbf16, #tpu.memory_space<vmem>>, vector<128x128xbf16>
    tpu.vector_store %arg8[%c0_70, %c0_71], %80 {strides = array<i32>} : memref<256x128xbf16, #tpu.memory_space<vmem>>, vector<128x128xbf16>,
    %82 = vector.extract_strided_slice %73 {offsets = [0, 128], sizes = [128, 128], strides = [1, 1]} : vector<128x256xf32> to vector<128x128xf32>
    %83 = vector.extract_strided_slice %76 {offsets = [0, 0], sizes = [128, 128], strides = [1, 1]} : vector<128x256xf32> to vector<128x128xf32>
    %84 = arith.addf %82, %83 : vector<128x128xf32>
    %85 = arith.truncf %84 : vector<128x128xf32> to vector<128x128xbf16>
    %c128_72 = arith.constant 128 : index
    %c0_73 = arith.constant 0 : index
    %86 = vector.load %arg8[%c128_72, %c0_73] : memref<256x128xbf16, #tpu.memory_space<vmem>>, vector<128x128xbf16>
    tpu.vector_store %arg8[%c128_72, %c0_73], %85 {strides = array<i32>} : memref<256x128xbf16, #tpu.memory_space<vmem>>, vector<128x128xbf16>,
    %c0_74 = arith.constant 0 : index
    %c0_75 = arith.constant 0 : index
    %87 = vector.load %arg8[%c0_74, %c0_75] : memref<256x128xbf16, #tpu.memory_space<vmem>>, vector<256x128xbf16>
    %c0_76 = arith.constant 0 : index
    %c0_77 = arith.constant 0 : index
    %c0_78 = arith.constant 0 : index
    %88 = vector.load %arg5[%c0_76, %c0_77, %c0_78] : memref<2x128x128xbf16, #tpu.memory_space<vmem>>, vector<1x128x128xbf16>
    %89 = vector.shape_cast %88 : vector<1x128x128xbf16> to vector<128x128xbf16>
    %cst_79 = arith.constant dense<0.000000e+00> : vector<256x128xf32>
    %90 = tpu.matmul %87, %89, %cst_79 {dimension_numbers = #tpu.dot_dimension_numbers<[1], [0], [0], [1], [0, 0, 1, 1], [], []>} : vector<256x128xbf16>, vector<128x128xbf16>, vector<256x128xf32> -> vector<256x128xf32>
    %c1_80 = arith.constant 1 : index
    %c0_81 = arith.constant 0 : index
    %c0_82 = arith.constant 0 : index
    %91 = vector.load %arg5[%c1_80, %c0_81, %c0_82] : memref<2x128x128xbf16, #tpu.memory_space<vmem>>, vector<1x128x128xbf16>
    %92 = vector.shape_cast %91 : vector<1x128x128xbf16> to vector<128x128xbf16>
    %cst_83 = arith.constant dense<0.000000e+00> : vector<256x128xf32>
    %93 = tpu.matmul %87, %92, %cst_83 {dimension_numbers = #tpu.dot_dimension_numbers<[1], [0], [0], [1], [0, 0, 1, 1], [], []>} : vector<256x128xbf16>, vector<128x128xbf16>, vector<256x128xf32> -> vector<256x128xf32>
    %94 = vector.extract_strided_slice %90 {offsets = [0, 0], sizes = [128, 128], strides = [1, 1]} : vector<256x128xf32> to vector<128x128xf32>
    %95 = vector.extract_strided_slice %93 {offsets = [128, 0], sizes = [128, 128], strides = [1, 1]} : vector<256x128xf32> to vector<128x128xf32>
    %96 = arith.subf %94, %95 : vector<128x128xf32>
    %97 = vector.extract_strided_slice %93 {offsets = [0, 0], sizes = [128, 128], strides = [1, 1]} : vector<256x128xf32> to vector<128x128xf32>
    %98 = vector.extract_strided_slice %90 {offsets = [128, 0], sizes = [128, 128], strides = [1, 1]} : vector<256x128xf32> to vector<128x128xf32>
    %99 = arith.addf %97, %98 : vector<128x128xf32>
    %c0_84 = arith.constant 0 : index
    %c0_85 = arith.constant 0 : index
    %c0_86 = arith.constant 0 : index
    %100 = vector.load %arg4[%c0_84, %c0_85, %c0_86] : memref<2x128x128xf32, #tpu.memory_space<vmem>>, vector<1x128x128xf32>
    %101 = vector.shape_cast %100 : vector<1x128x128xf32> to vector<128x128xf32>
    %102 = arith.mulf %96, %101 : vector<128x128xf32>
    %c1_87 = arith.constant 1 : index
    %c0_88 = arith.constant 0 : index
    %c0_89 = arith.constant 0 : index
    %103 = vector.load %arg4[%c1_87, %c0_88, %c0_89] : memref<2x128x128xf32, #tpu.memory_space<vmem>>, vector<1x128x128xf32>
    %104 = vector.shape_cast %103 : vector<1x128x128xf32> to vector<128x128xf32>
    %105 = arith.mulf %99, %104 : vector<128x128xf32>
    %106 = arith.subf %102, %105 : vector<128x128xf32>
    %c0_90 = arith.constant 0 : index
    %c0_91 = arith.constant 0 : index
    %c0_92 = arith.constant 0 : index
    %c0_93 = arith.constant 0 : index
    %107 = vector.load %arg6[%c0_90, %c0_91, %c0_92, %c0_93] : memref<1x2x128x128xf32, #tpu.memory_space<vmem>>, vector<1x1x128x128xf32>
    %108 = vector.shape_cast %107 : vector<1x1x128x128xf32> to vector<128x128xf32>
    %109 = vector.shape_cast %106 : vector<128x128xf32> to vector<1x1x128x128xf32>
    tpu.vector_store %arg6[%c0_90, %c0_91, %c0_92, %c0_93], %109 {strides = array<i32>} : memref<1x2x128x128xf32, #tpu.memory_space<vmem>>, vector<1x1x128x128xf32>,
    %c1_94 = arith.constant 1 : index
    %c0_95 = arith.constant 0 : index
    %c0_96 = arith.constant 0 : index
    %110 = vector.load %arg4[%c1_94, %c0_95, %c0_96] : memref<2x128x128xf32, #tpu.memory_space<vmem>>, vector<1x128x128xf32>
    %111 = vector.shape_cast %110 : vector<1x128x128xf32> to vector<128x128xf32>
    %112 = arith.mulf %96, %111 : vector<128x128xf32>
    %c0_97 = arith.constant 0 : index
    %c0_98 = arith.constant 0 : index
    %c0_99 = arith.constant 0 : index
    %113 = vector.load %arg4[%c0_97, %c0_98, %c0_99] : memref<2x128x128xf32, #tpu.memory_space<vmem>>, vector<1x128x128xf32>
    %114 = vector.shape_cast %113 : vector<1x128x128xf32> to vector<128x128xf32>
    %115 = arith.mulf %99, %114 : vector<128x128xf32>
    %116 = arith.addf %112, %115 : vector<128x128xf32>
    %c0_100 = arith.constant 0 : index
    %c1_101 = arith.constant 1 : index
    %c0_102 = arith.constant 0 : index
    %c0_103 = arith.constant 0 : index
    %117 = vector.load %arg6[%c0_100, %c1_101, %c0_102, %c0_103] : memref<1x2x128x128xf32, #tpu.memory_space<vmem>>, vector<1x1x128x128xf32>
    %118 = vector.shape_cast %117 : vector<1x1x128x128xf32> to vector<128x128xf32>
    %119 = vector.shape_cast %116 : vector<128x128xf32> to vector<1x1x128x128xf32>
    tpu.vector_store %arg6[%c0_100, %c1_101, %c0_102, %c0_103], %119 {strides = array<i32>} : memref<1x2x128x128xf32, #tpu.memory_space<vmem>>, vector<1x1x128x128xf32>,
    return
  }
  func.func @transform_0(%arg0: i32) -> (i32, i32, i32, i32) {
    %c0_i32 = arith.constant 0 : i32
    %c0_i32_0 = arith.constant 0 : i32
    %c0_i32_1 = arith.constant 0 : i32
    %c0_i32_2 = arith.constant 0 : i32
    return %arg0, %c0_i32, %c0_i32_0, %c0_i32_1 : i32, i32, i32, i32
  }
  func.func @transform_1(%arg0: i32) -> (i32, i32, i32) {
    %c0_i32 = arith.constant 0 : i32
    %c0_i32_0 = arith.constant 0 : i32
    %c0_i32_1 = arith.constant 0 : i32
    %c0_i32_2 = arith.constant 0 : i32
    return %c0_i32, %c0_i32_0, %c0_i32_1 : i32, i32, i32
  }
  func.func @transform_2(%arg0: i32) -> (i32, i32, i32) {
    %c0_i32 = arith.constant 0 : i32
    %c0_i32_0 = arith.constant 0 : i32
    %c0_i32_1 = arith.constant 0 : i32
    %c0_i32_2 = arith.constant 0 : i32
    return %c0_i32, %c0_i32_0, %c0_i32_1 : i32, i32, i32
  }
  func.func @transform_3(%arg0: i32) -> (i32, i32, i32) {
    %c0_i32 = arith.constant 0 : i32
    %c0_i32_0 = arith.constant 0 : i32
    %c0_i32_1 = arith.constant 0 : i32
    %c0_i32_2 = arith.constant 0 : i32
    return %c0_i32, %c0_i32_0, %c0_i32_1 : i32, i32, i32
  }
  func.func @transform_4(%arg0: i32) -> (i32, i32, i32) {
    %c0_i32 = arith.constant 0 : i32
    %c0_i32_0 = arith.constant 0 : i32
    %c0_i32_1 = arith.constant 0 : i32
    %c0_i32_2 = arith.constant 0 : i32
    return %c0_i32, %c0_i32_0, %c0_i32_1 : i32, i32, i32
  }
  func.func @transform_5(%arg0: i32) -> (i32, i32, i32, i32) {
    %c0_i32 = arith.constant 0 : i32
    %c0_i32_0 = arith.constant 0 : i32
    %c0_i32_1 = arith.constant 0 : i32
    %c0_i32_2 = arith.constant 0 : i32
    return %arg0, %c0_i32, %c0_i32_0, %c0_i32_1 : i32, i32, i32, i32
  }
}

</mosaic_0001>

<bundles_post_ra>
// kernel: tpu_custom_call.1
= control target key start
LH: loop header
LB: loop body
LE: loop exit
PB: predicated region body
PF: predicated region fallthrough
CT: control target
= control target key end

     0   :  { %10 = vsyncpa [#allocation5], 0  ;;  %s6036_s0 = inlined_call_operand.hbm [shape: f32[2,2,128,128], index: 0, kind: input, shape index: {}]   ;;  %s6037_s1 = inlined_call_operand.hbm [shape: bf16[2,128,128], index: 1, kind: input, shape index: {}]   ;;  %s6038_s2 = inlined_call_operand.hbm [shape: bf16[2,128,128], index: 2, kind: input, shape index: {}]   ;;  %s6039_s3 = inlined_call_operand.hbm [shape: f32[2,128,128], index: 3, kind: input, shape index: {}]   ;;  %s6040_s4 = inlined_call_operand.hbm [shape: bf16[2,128,128], index: 4, kind: input, shape index: {}]   ;;  %s6041_s5 = inlined_call_operand.hbm [shape: f32[2,2,128,128], index: 5, kind: output, shape index: {}]  }
   0x1   :  { %12 = vsyncpa [#allocation5 + $0x1], 0 }
   0x2   :  { %13 = vsyncpa [#allocation8], 0 }
   0x3   :  { %14 = vsyncpa [#allocation11], 0 }
   0x4   :  { %15 = vsyncpa [#allocation6], 0 }
   0x5   :  { %17 = vsyncpa [#allocation6 + $0x1], 0  ;;  %s5558_s18 = smov 0   ;;  %s5560_s19 = smov 0  }
   0x6   :  { %s5562_s20 = smov 0   ;;  %s5564_s21 = smov 0  }
   0x7 LB: > { %s5579_s22 = sadd.s32 4294967295, %s5513_s21   ;;  %s4089_s23 = sadd.s32 4294967294, %s5513_s21   ;;  %s5513_s21 = sphi %s5564_s21, %s6067_s21   ;;  %s5509_s20 = sphi %s5562_s20, %s6066_s20   ;;  %s5505_s19 = sphi %s5560_s19, %s6065_s19   ;;  %s5501_s18 = sphi %s5558_s18, %s6064_s18  }
   0x8   : > { %p43_p0 = scmp.ne.s32.totalorder %s5505_s19, %s5501_s18  ;;  %p6042_p1 = scmp.eq.s32.totalorder %s5579_s22, 0 }
   0x9   : > { %p157_p3 = scmp.eq.s32.totalorder %s4089_s23, 1  ;;  %p4090_p5 = scmp.ge.s32.totalorder %s5513_s21, 1 }
   0xa   : > { %p5588_p4 = por %p6042_p1, %p43_p0  ;;  %p164_p7 = scmp.lt.s32.totalorder %s5513_s21, 3 }
   0xb   : > { %p5593_p6 = por %p157_p3, %p43_p0  ;;  %s5515_s27 = smov [#allocation7]  }
   0xc   : > { %s6047_s24 = scalar_select %p5588_p4, 1, 0 }
   0xd   : > { %s6048_s25 = scalar_select %p5593_p6, 1, 0 }
   0xe   : > { %p5598_p8 = pnand %p4090_p5, %p164_p7  ;;  %s176_s28 = sshll.u32 %s5515_s27, 4  ;;  %s177_s28 = int_to_ptr.vmem [resolvable:$true] %s176_s28 }
   0xf   : > { %s5516_s30 = smov [#allocation10]   ;;  %s5320_s7 = scalar_lea.vmem %s177_s28, 2048 }
  0x10   : > { %s6049_s26 = scalar_select %p5598_p8, 1, 0 }
  0x11   : > { %p5027_p9 = pneg %p5598_p8  ;;  %s202_s6 = sshll.u32 %s5516_s30, 4  ;;  %s203_s6 = int_to_ptr.vmem [resolvable:$true] %s202_s6 }
  0x12   : > { %p5321_p13 = scmp.ne.s32.totalorder %s177_s28, %s5320_s7  ;;  %p5328_p5 = scmp.lt.s32.totalorder %s177_s28, %s177_s28 }
  0x13   : > { %p5607_p11 = pnand %p5027_p9, %p6042_p1  ;;  %p5329_p7 = scmp.lt.s32.totalorder %s5320_s7, %s5320_s7 }
  0x15   : > { %p5311_p12 = pneg %p5607_p11  ;;  %p5330_p10 = por %p5329_p7, %p5328_p5 }
  0x17   : > { %p5323_p0 = pnand %p5321_p13, %p5311_p12 }
  0x19   : > { %p5324_p3 = pneg %p5323_p0 }
  0x1b   : > { %p5331_p9 = pnand %p5330_p10, %p5324_p3 }
  0x1d   : > { %5334 = shalt.err (!%p5331_p9)
}
  0x1e   : > { %s5517_s8 = smov 64   ;;  %s5518_s9 = smov 4  }
  0x1f   : > { %5030 = dma.hbm_to_vmem [thread:$0]  (!%p5607_p11), %s6037_s1, 2048, %s177_s28, [#allocation8], %s5517_s8, %s5517_s8, %s5518_s9  }
  0x20   : > { %s5346_s12 = scalar_lea.vmem %s203_s6, 4096  ;;  %p5354_p10 = scmp.lt.s32.totalorder %s203_s6, %s203_s6 }
  0x21   : > { %p5347_p13 = scmp.ne.s32.totalorder %s203_s6, %s5346_s12  ;;  %p5355_p3 = scmp.lt.s32.totalorder %s5346_s12, %s5346_s12 }
  0x23   : > { %p5349_p0 = pnand %p5347_p13, %p5311_p12  ;;  %p5356_p7 = por %p5355_p3, %p5354_p10 }
  0x25   : > { %p5350_p5 = pneg %p5349_p0 }
  0x27   : > { %p5357_p9 = pnand %p5356_p7, %p5350_p5 }
  0x29   : > { %5360 = shalt.err (!%p5357_p9)
}
  0x2a   : > { %s6043_s13 = smov 128   ;;  %s5520_s14 = smov 8  }
  0x2b   : > { %5036 = dma.hbm_to_vmem [thread:$0]  (!%p5607_p11), %s6039_s3, 4096, %s203_s6, [#allocation11], %s6043_s13, %s6043_s13, %s5520_s14  }
  0x2c   : > { %s5521_s17 = smov [#allocation9]   ;;  %s5522_s27 = smov [#allocation12]  }
  0x2d   : > { %s189_s23 = sshll.u32 %s5521_s17, 4  ;;  %s215_s28 = sshll.u32 %s5522_s27, 4  ;;  %s190_s23 = int_to_ptr.vmem [resolvable:$true] %s189_s23  ;;  %s216_s28 = int_to_ptr.vmem [resolvable:$true] %s215_s28 }
  0x2e   : > { %s5372_s30 = scalar_lea.vmem %s190_s23, 2048  ;;  %p5380_p10 = scmp.lt.s32.totalorder %s190_s23, %s190_s23 }
  0x2f   : > { %p5373_p13 = scmp.ne.s32.totalorder %s190_s23, %s5372_s30  ;;  %p5381_p3 = scmp.lt.s32.totalorder %s5372_s30, %s5372_s30 }
  0x31   : > { %p5375_p0 = pnand %p5373_p13, %p5311_p12  ;;  %p5382_p7 = por %p5381_p3, %p5380_p10 }
  0x33   : > { %p5376_p5 = pneg %p5375_p0 }
  0x35   : > { %p5383_p9 = pnand %p5382_p7, %p5376_p5 }
  0x37   : > { %5386 = shalt.err (!%p5383_p9)
}
  0x38   : > { %5033 = dma.hbm_to_vmem [thread:$0]  (!%p5607_p11), %s6038_s2, 2048, %s190_s23, [#allocation8], %s5517_s8, %s5517_s8, %s5518_s9  }
  0x39   : > { %s5398_s10 = scalar_lea.vmem %s216_s28, 2048  ;;  %p5406_p2 = scmp.lt.s32.totalorder %s216_s28, %s216_s28 }
  0x3a   : > { %p5399_p1 = scmp.ne.s32.totalorder %s216_s28, %s5398_s10  ;;  %p5407_p10 = scmp.lt.s32.totalorder %s5398_s10, %s5398_s10 }
  0x3c   : > { %p5401_p13 = pnand %p5399_p1, %p5311_p12  ;;  %p5408_p5 = por %p5407_p10, %p5406_p2 }
  0x3e   : > { %p5402_p0 = pneg %p5401_p13 }
  0x40   : > { %p5409_p3 = pnand %p5408_p5, %p5402_p0 }
  0x42   : > { %5412 = shalt.err (!%p5409_p3)
}
  0x43   : > { %5039 = dma.hbm_to_vmem [thread:$0]  (!%p5607_p11), %s6040_s4, 2048, %s216_s28, [#allocation11], %s5517_s8, %s5517_s8, %s5518_s9  }
  0x44   : > { %s5658_s15 = sadd.s32 1, %s5513_s21   ;;  %s30_s16 = sadd.s32 1, %s5509_s20 }
  0x45   : > { %s27_s29 = ssub.s32 %s5513_s21, %s5658_s15  ;;  %p37_p2 = scmp.ne.s32.totalorder %s5509_s20, %s5505_s19 }
  0x46   : > { %p28_p1 = scmp.eq.s32.totalorder %s27_s29, 0  ;;  %p38_p12 = scmp.eq.s32.totalorder %s5513_s21, 0 }
  0x47   : > { %p6051_p9 = scmp.eq.s32.totalorder %s5579_s22, 1  ;;  %p5052_p0 = scmp.lt.s32.totalorder %s5513_s21, 2 }
  0x48   : > { %s5667_s17 = scalar_select %p28_p1, %s5509_s20, %s30_s16  }
  0x49   : > { %p39_p7 = por %p38_p12, %p37_p2  ;;  %p5671_p13 = por %p6051_p9, %p37_p2 }
  0x4a   : > { %s229_s27 = sand.u32 1, %s5509_s20   ;;  %s4463_s8 = sshll.u32 %s5513_s21, 12 }
  0x4b   : > { %s6052_s23 = scalar_select %p5671_p13, 1, 0 }
  0x4c   : > { %s4096_s30 = sshll.u32 %s229_s27, 8  ;;  %s5681_s6 = scalar_lea.hbm %s6036_s0, %s4463_s8 }
  0x4d   : > { %s233_s7 = scalar_lea.vmem [#allocation4], %s4096_s30  ;;  %p5685_p11 = pnand %p5052_p0, %p39_p7 }
  0x4e   : > { %s240_s10 = sshll.u32 %s233_s7, 4  ;;  %s5689_s12 = scalar_lea.sflag [#allocation5], %s229_s27  ;;  %s5683_s10 = int_to_ptr.vmem [resolvable:$true] %s240_s10 }
  0x4f   : > { %s5413_s29 = scalar_lea.hbm %s5681_s6, 4096  ;;  %p5415_p5 = pneg %p5685_p11 }
  0x50   : > { %p5414_p10 = scmp.ne.s32.totalorder %s5681_s6, %s5413_s29  ;;  %s5418_s30 = scalar_lea.hbm %s6036_s0, 8192 }
  0x51   : > { %p5419_p2 = scmp.lt.s32.totalorder %s5681_s6, %s6036_s0  ;;  %p5420_p12 = scmp.lt.s32.totalorder %s5418_s30, %s5413_s29 }
  0x52   : > { %p5416_p3 = pnand %p5415_p5, %p5414_p10 }
  0x53   : > { %p5421_p7 = por %p5420_p12, %p5419_p2 }
  0x54   : > { %p5417_p1 = pneg %p5416_p3 }
  0x56   : > { %p5422_p9 = pnand %p5421_p7, %p5417_p1 }
  0x58   : > { %5425 = shalt.err (!%p5422_p9)
}
  0x59   : > { %s5426_s27 = scalar_lea.vmem %s5683_s10, 4096  ;;  %s5523_s7 = smov [#allocation4]  }
  0x5a   : > { %p5427_p0 = scmp.ne.s32.totalorder %s5683_s10, %s5426_s27  ;;  %s5431_s13 = sshll.u32 %s5523_s7, 4  ;;  %s5432_s13 = int_to_ptr.vmem [resolvable:$false] %s5431_s13 }
  0x5b   : > { %s5433_s16 = scalar_lea.vmem %s5432_s13, 8192  ;;  %p5434_p3 = scmp.lt.s32.totalorder %s5683_s10, %s5432_s13 }
  0x5c   : > { %p5429_p6 = pnand %p5427_p0, %p5415_p5  ;;  %p5435_p13 = scmp.lt.s32.totalorder %s5433_s16, %s5426_s27 }
  0x5e   : > { %p5430_p10 = pneg %p5429_p6  ;;  %p5436_p4 = por %p5435_p13, %p5434_p3 }
  0x60   : > { %p5437_p8 = pnand %p5436_p4, %p5430_p10 }
  0x62   : > { %5440 = shalt.err (!%p5437_p8)
}
  0x63   : > { %s6054_s29 = smov 128   ;;  %p6055_p6 = scmp.ne.s32.totalorder %s6049_s26, 0 }
  0x64   : > { %5043 = dma.hbm_to_vmem [thread:$0]  (!%p5685_p11), %s5681_s6, 4096, %s5683_s10, %s5689_s12, %s6054_s29, %s6054_s29, %s5520_s14  }
  0x65   : > { %252 = sbr.rel (%p6055_p6) target bundleno = 1238 (0x4d6), region = 40  ;;  %s5716_s8 = sand.u32 (!%p6055_p6), 1, %s5505_s19  }
  0x66   : > { %s4100_s13 = sshll.u32 (!%p6055_p6), %s5716_s8, 8  ;;  %s255_s30 = scalar_lea.sflag (!%p6055_p6), [#allocation5], %s5716_s8 }
  0x67   : > { %s5722_s11 = scalar_lea.vmem (!%p6055_p6), [#allocation4], %s4100_s13  ;;  %p6056_p4 = scmp.ne.s32.totalorder (!%p6055_p6), %s6047_s24, 0 }
  0x6a   : > { %5484 = dma.done.wait (%p6056_p4), %s255_s30, 4096  }
  0x6b   : > { %5486 = vsyncadd (%p6056_p4), %s255_s30, 4294963200  ;;  %p6057_p8 = scmp.eq.s32.totalorder %s5579_s22, 0 }
  0x6d   : > { %5488 = dma.done.wait (%p6057_p8), [#allocation8], 4096   ;;  %p6058_p13 = pmov %p6057_p8 }
  0x6e   : > { %p6059_p11 = pmov %p6057_p8 }
  0x6f   : > { %5490 = vsyncadd (%p6058_p13), [#allocation8], 4294963200 }
  0x70   : > { %5492 = dma.done.wait (%p6059_p11), [#allocation11], 6144   ;;  %p6060_p5 = pmov %p6057_p8 }
  0x71   : > { %v5524_v0 = vmov 0   ;;  %v316_v1 = vld [vmem:[%s5722_s11 + $0x70] sm:$0xff]  ;;  %v317_v2 = vld [vmem:[%s5722_s11 + $0x78] sm:$0xff]  ;;  %v314_v13 = vld [vmem:[%s5722_s11 + $0x60] sm:$0xff]  ;;  %s5926_s24 = scalar_lea.vmem [#allocation13], %s4100_s13  ;;  %s4528_s26 = sshll.u32 %s5579_s22, 12 }
  0x72   : > { %5494 = vsyncadd (%p6060_p5), [#allocation11], 4294961152  ;;  %992 = vmatprep.mubr.bf16.mxu0 %v5524_v0  ;;  %1170 = vmatprep.mubr.bf16.mxu1 %v5524_v0  ;;  %v4120_v3 = vld [vmem:[%s5722_s11 + $0xf0] sm:$0xff]  ;;  %v325_v4 = vpack.c.bf16 %v317_v2, %v316_v1  ;;  %v4121_v5 = vld [vmem:[%s5722_s11 + $0xf8] sm:$0xff]  ;;  %s3978_s14 = sshll.u32 %s5926_s24, 4  ;;  %s5989_s12 = scalar_lea.hbm %s6041_s5, %s4528_s26  ;;  %s5991_s14 = int_to_ptr.vmem [resolvable:$true] %s3978_s14 }
  0x73   : > { %v350_v6 = vpack.c.bf16 %v4121_v5, %v4120_v3  ;;  %v5101_v7 = vld [vmem:[#allocation7 + $0x38] sm:$0xff]   ;;  %v315_v14 = vld [vmem:[%s5722_s11 + $0x68] sm:$0xff]  ;;  %v4118_v17 = vld [vmem:[%s5722_s11 + $0xe0] sm:$0xff]  ;;  %s3965_s22 = scalar_lea.sflag [#allocation6], %s5716_s8  ;;  %s5441_s9 = scalar_lea.vmem %s5991_s14, 4096 }
  0x74   : > { %v5102_v8 = vld [vmem:[#allocation7 + $0x78] sm:$0xff]   ;;  %v422_v9 = vmul.bf16 %v5101_v7, %v325_v4  ;;  %v324_v16 = vpack.c.bf16 %v315_v14, %v314_v13  ;;  %v4119_v18 = vld [vmem:[%s5722_s11 + $0xe8] sm:$0xff]  ;;  %v5108_v22 = vld [vmem:[#allocation7 + $0x30] sm:$0xff]   ;;  %p5442_p1 = scmp.ne.s32.totalorder %s5991_s14, %s5441_s9  ;;  %p6061_p2 = scmp.ne.s32.totalorder %s6052_s23, 0 }
  0x75   : > { %v5103_v10 = vld [vmem:[#allocation7 + $0x78] sm:$0xff]   ;;  %v495_v11 = vmul.bf16 %v5102_v8, %v350_v6  ;;  %v349_v21 = vpack.c.bf16 %v4119_v18, %v4118_v17  ;;  %v5109_v23 = vld [vmem:[#allocation7 + $0x70] sm:$0xff]   ;;  %v5115_v42 = vld [vmem:[#allocation7 + $0x28] sm:$0xff]   ;;  %s5525_s28 = smov [#allocation13]  }
  0x76   : > { %v5104_v12 = vld [vmem:[#allocation7 + $0x38] sm:$0xff]   ;;  %v647_v15 = vmul.bf16 %v5103_v10, %v325_v4  ;;  %v421_v27 = vmul.bf16 %v5108_v22, %v324_v16  ;;  %v5110_v28 = vld [vmem:[#allocation7 + $0x70] sm:$0xff]   ;;  %v5116_v43 = vld [vmem:[#allocation7 + $0x68] sm:$0xff]   ;;  %p5443_p12 = pnand %p5442_p1, %p6061_p2  ;;  %s5445_s27 = sshll.u32 %s5525_s28, 4  ;;  %s5446_s27 = int_to_ptr.vmem [resolvable:$false] %s5445_s27 }
  0x77   : > { %v503_v19 = vsub.bf16 %v422_v9, %v495_v11  ;;  %v719_v20 = vmul.bf16 %v5104_v12, %v350_v6  ;;  %v494_v29 = vmul.bf16 %v5109_v23, %v349_v21  ;;  %v5111_v30 = vld [vmem:[#allocation7 + $0x30] sm:$0xff]   ;;  %v646_v34 = vmul.bf16 %v5110_v28, %v324_v16  ;;  %v313_v35 = vld [vmem:[%s5722_s11 + $0x58] sm:$0xff]  ;;  %v5117_v48 = vld [vmem:[#allocation7 + $0x68] sm:$0xff]   ;;  %s5447_s7 = scalar_lea.vmem %s5446_s27, 8192  ;;  %p5448_p9 = scmp.lt.s32.totalorder %s5991_s14, %s5446_s27 }
  0x78   : > { %v312_v31 = vld [vmem:[%s5722_s11 + $0x50] sm:$0xff]  ;;  %v4117_v37 = vld [vmem:[%s5722_s11 + $0xd8] sm:$0xff]  ;;  %v718_v39 = vmul.bf16 %v5111_v30, %v349_v21  ;;  %v5118_v50 = vld [vmem:[#allocation7 + $0x28] sm:$0xff]   ;;  %p5444_p7 = pneg %p5443_p12  ;;  %p5449_p0 = scmp.lt.s32.totalorder %s5447_s7, %s5441_s9 }
  0x79   : > { %v4152_v24 = vcombine.low %v503_v19, %v503_v19  ;;  %v4153_v25 = vcombine.high %v503_v19, %v503_v19  ;;  %v727_v26 = vadd.bf16 %v719_v20, %v647_v15  ;;  %v4116_v36 = vld [vmem:[%s5722_s11 + $0xd0] sm:$0xff]  ;;  %v502_v38 = vsub.bf16 %v421_v27, %v494_v29  ;;  %v310_v54 = vld [vmem:[%s5722_s11 + $0x40] sm:$0xff]  ;;  %v311_v55 = vld [vmem:[%s5722_s11 + $0x48] sm:$0xff] }
  0x7a   : > { %v323_v40 = vpack.c.bf16 %v313_v35, %v312_v31  ;;  %v348_v41 = vpack.c.bf16 %v4117_v37, %v4116_v36  ;;  %v726_v46 = vadd.bf16 %v718_v39, %v646_v34  ;;  %v4114_v56 = vld [vmem:[%s5722_s11 + $0xc0] sm:$0xff]  ;;  %v322_v59 = vpack.c.bf16 %v311_v55, %v310_v54  ;;  %v4115_v60 = vld [vmem:[%s5722_s11 + $0xc8] sm:$0xff]  ;;  %v308_v12 = vld [vmem:[%s5722_s11 + $0x30] sm:$0xff]  ;;  %p5450_p10 = por %p5449_p0, %p5448_p9 }
  0x7b   : > { %574 = vst [vmem:[#allocation2 + $0x70] sm:$0xf] %v4152_v24  ;;  %575 = vst [vmem:[#allocation2 + $0x78] sm:$0xf] %v4153_v25  ;;  %v4184_v32 = vcombine.low %v727_v26, %v727_v26  ;;  %v4185_v33 = vcombine.high %v727_v26, %v727_v26  ;;  %v4150_v44 = vcombine.low %v502_v38, %v502_v38  ;;  %v5122_v62 = vld [vmem:[#allocation7 + $0x20] sm:$0xff]   ;;  %v309_v15 = vld [vmem:[%s5722_s11 + $0x38] sm:$0xff] }
  0x7c   : > { %v4151_v45 = vcombine.high %v502_v38, %v502_v38  ;;  %v420_v47 = vmul.bf16 %v5115_v42, %v323_v40  ;;  %v493_v49 = vmul.bf16 %v5116_v43, %v348_v41  ;;  %v4182_v51 = vcombine.low %v726_v46, %v726_v46  ;;  %v5123_v3 = vld [vmem:[#allocation7 + $0x60] sm:$0xff]   ;;  %v4112_v16 = vld [vmem:[%s5722_s11 + $0xb0] sm:$0xff]  ;;  %v4113_v17 = vld [vmem:[%s5722_s11 + $0xb8] sm:$0xff]  ;;  %p5451_p3 = pnand %p5450_p10, %p5444_p7 }
  0x7d   : > { %798 = vst [vmem:[#allocation2 + $0x74] sm:$0xf] %v4184_v32  ;;  %799 = vst [vmem:[#allocation2 + $0x7c] sm:$0xf] %v4185_v33  ;;  %v4183_v52 = vcombine.high %v726_v46, %v726_v46  ;;  %v645_v53 = vmul.bf16 %v5117_v48, %v323_v40  ;;  %v717_v58 = vmul.bf16 %v5118_v50, %v348_v41  ;;  %v5124_v10 = vld [vmem:[#allocation7 + $0x60] sm:$0xff]   ;;  %v5129_v20 = vld [vmem:[#allocation7 + $0x18] sm:$0xff]  }
  0x7e   : > { %572 = vst [vmem:[#allocation2 + $0x60] sm:$0xf] %v4150_v44  ;;  %573 = vst [vmem:[#allocation2 + $0x68] sm:$0xf] %v4151_v45  ;;  %v501_v57 = vsub.bf16 %v420_v47, %v493_v49  ;;  %v347_v61 = vpack.c.bf16 %v4115_v60, %v4114_v56  ;;  %v419_v5 = vmul.bf16 %v5122_v62, %v322_v59  ;;  %v5125_v11 = vld [vmem:[#allocation7 + $0x20] sm:$0xff]   ;;  %v5130_v28 = vld [vmem:[#allocation7 + $0x58] sm:$0xff]  }
  0x7f   : > { %796 = vst [vmem:[#allocation2 + $0x64] sm:$0xf] %v4182_v51  ;;  %797 = vst [vmem:[#allocation2 + $0x6c] sm:$0xf] %v4183_v52  ;;  %v725_v2 = vadd.bf16 %v717_v58, %v645_v53  ;;  %v644_v14 = vmul.bf16 %v5124_v10, %v322_v59  ;;  %v321_v19 = vpack.c.bf16 %v309_v15, %v308_v12  ;;  %v5131_v31 = vld [vmem:[#allocation7 + $0x58] sm:$0xff]   ;;  %v306_v34 = vld [vmem:[%s5722_s11 + $0x20] sm:$0xff] }
  0x80   : > { %v4148_v63 = vcombine.low %v501_v57, %v501_v57  ;;  %v4149_v1 = vcombine.high %v501_v57, %v501_v57  ;;  %v492_v9 = vmul.bf16 %v5123_v3, %v347_v61  ;;  %v716_v18 = vmul.bf16 %v5125_v11, %v347_v61  ;;  %v5132_v33 = vld [vmem:[#allocation7 + $0x18] sm:$0xff]   ;;  %v307_v35 = vld [vmem:[%s5722_s11 + $0x28] sm:$0xff]  ;;  %v4110_v42 = vld [vmem:[%s5722_s11 + $0xa0] sm:$0xff] }
  0x81   : > { %v4180_v7 = vcombine.low %v725_v2, %v725_v2  ;;  %v4181_v8 = vcombine.high %v725_v2, %v725_v2  ;;  %v346_v24 = vpack.c.bf16 %v4113_v17, %v4112_v16  ;;  %v418_v27 = vmul.bf16 %v5129_v20, %v321_v19  ;;  %v4111_v43 = vld [vmem:[%s5722_s11 + $0xa8] sm:$0xff]  ;;  %v5136_v45 = vld [vmem:[#allocation7 + $0x10] sm:$0xff]   ;;  %v305_v58 = vld [vmem:[%s5722_s11 + $0x18] sm:$0xff] }
  0x82   : > { %v5107_v6 = vld [vmem:[#allocation2 + $0x70] ss:$8 sps:$4 sm:$0xff]   ;;  %570 = vst [vmem:[#allocation2 + $0x50] sm:$0xf] %v4148_v63  ;;  %571 = vst [vmem:[#allocation2 + $0x58] sm:$0xf] %v4149_v1  ;;  %v500_v13 = vsub.bf16 %v419_v5, %v492_v9  ;;  %v724_v26 = vadd.bf16 %v716_v18, %v644_v14  ;;  %v643_v37 = vmul.bf16 %v5131_v31, %v321_v19 }
  0x83   : > { %794 = vst [vmem:[#allocation2 + $0x54] sm:$0xf] %v4180_v7  ;;  %795 = vst [vmem:[#allocation2 + $0x5c] sm:$0xf] %v4181_v8  ;;  %v491_v32 = vmul.bf16 %v5130_v28, %v346_v24  ;;  %v320_v38 = vpack.c.bf16 %v307_v35, %v306_v34  ;;  %v715_v41 = vmul.bf16 %v5132_v33, %v346_v24  ;;  %v5137_v49 = vld [vmem:[#allocation7 + $0x50] sm:$0xff]   ;;  %v4109_v2 = vld [vmem:[%s5722_s11 + $0x98] sm:$0xff] }
  0x84   : > { %v5105_v4 = vld [vmem:[#allocation2 + $0x74] ss:$8 sps:$4 sm:$0xff]   ;;  %v4146_v22 = vcombine.low %v500_v13, %v500_v13  ;;  %v4147_v23 = vcombine.high %v500_v13, %v500_v13  ;;  %v4178_v29 = vcombine.low %v724_v26, %v724_v26  ;;  %v4179_v30 = vcombine.high %v724_v26, %v724_v26  ;;  %v5144_v8 = vld [vmem:[#allocation7 + $0x48] sm:$0xff]   ;;  %v302_v15 = vld [vmem:[%s5722_s11] sm:$0xff] }
  0x85   : > { %960 = vmatprep.subr.bf16.mxu0 %v5105_v4  ;;  %1138 = vmatprep.subr.bf16.mxu1 %v5105_v4  ;;  %v5114_v25 = vld [vmem:[#allocation2 + $0x60] ss:$8 sps:$4 sm:$0xff]   ;;  %v499_v40 = vsub.bf16 %v418_v27, %v491_v32  ;;  %v345_v44 = vpack.c.bf16 %v4111_v43, %v4110_v42  ;;  %v723_v48 = vadd.bf16 %v715_v41, %v643_v37  ;;  %v5138_v51 = vld [vmem:[#allocation7 + $0x50] sm:$0xff]  }
  0x86   : > { %961 = vmatpush1.bf16.msra.mxu0 %v5107_v6  ;;  %1139 = vmatpush1.bf16.msra.mxu1 %v5107_v6  ;;  %v5112_v21 = vld [vmem:[#allocation2 + $0x64] ss:$8 sps:$4 sm:$0xff]   ;;  %568 = vst [vmem:[#allocation2 + $0x40] sm:$0xf] %v4146_v22  ;;  %569 = vst [vmem:[#allocation2 + $0x48] sm:$0xf] %v4147_v23  ;;  %v417_v50 = vmul.bf16 %v5136_v45, %v320_v38  ;;  %v642_v56 = vmul.bf16 %v5138_v51, %v320_v38 }
  0x87   : > { %962 = vmatprep.subr.bf16.mxu0 %v5112_v21  ;;  %1140 = vmatprep.subr.bf16.mxu1 %v5112_v21  ;;  %792 = vst [vmem:[#allocation2 + $0x44] sm:$0xf] %v4178_v29  ;;  %793 = vst [vmem:[#allocation2 + $0x4c] sm:$0xf] %v4179_v30  ;;  %v4144_v46 = vcombine.low %v499_v40, %v499_v40  ;;  %v4145_v47 = vcombine.high %v499_v40, %v499_v40  ;;  %v5139_v55 = vld [vmem:[#allocation7 + $0x10] sm:$0xff]   ;;  %v5143_v6 = vld [vmem:[#allocation7 + $0x8] sm:$0xff]  }
  0x88   : > { %v4176_v52 = vcombine.low %v723_v48, %v723_v48  ;;  %v4177_v53 = vcombine.high %v723_v48, %v723_v48  ;;  %v490_v54 = vmul.bf16 %v5137_v49, %v345_v44  ;;  %v304_v57 = vld [vmem:[%s5722_s11 + $0x10] sm:$0xff]  ;;  %v714_v62 = vmul.bf16 %v5139_v55, %v345_v44  ;;  %v5145_v12 = vld [vmem:[#allocation7 + $0x48] sm:$0xff]   ;;  %v4106_v18 = vld [vmem:[%s5722_s11 + $0x80] sm:$0xff] }
  0x89   : > { %v5121_v39 = vld [vmem:[#allocation2 + $0x50] ss:$8 sps:$4 sm:$0xff]   ;;  %566 = vst [vmem:[#allocation2 + $0x30] sm:$0xf] %v4144_v46  ;;  %567 = vst [vmem:[#allocation2 + $0x38] sm:$0xf] %v4145_v47  ;;  %v319_v63 = vpack.c.bf16 %v305_v58, %v304_v57 }
  0x8a   : > { %963 = vmatpush1.bf16.msra.mxu0 %v5114_v25  ;;  %1141 = vmatpush1.bf16.msra.mxu1 %v5114_v25  ;;  %v5119_v36 = vld [vmem:[#allocation2 + $0x54] ss:$8 sps:$4 sm:$0xff]   ;;  %790 = vst [vmem:[#allocation2 + $0x34] sm:$0xf] %v4176_v52  ;;  %791 = vst [vmem:[#allocation2 + $0x3c] sm:$0xf] %v4177_v53  ;;  %v498_v61 = vsub.bf16 %v417_v50, %v490_v54  ;;  %v722_v5 = vadd.bf16 %v714_v62, %v642_v56 }
  0x8b   : > { %964 = vmatprep.subr.bf16.mxu0 %v5119_v36  ;;  %1142 = vmatprep.subr.bf16.mxu1 %v5119_v36  ;;  %v4108_v59 = vld [vmem:[%s5722_s11 + $0x90] sm:$0xff]  ;;  %v416_v11 = vmul.bf16 %v5143_v6, %v319_v63  ;;  %v5146_v14 = vld [vmem:[#allocation7 + $0x8] sm:$0xff]   ;;  %v641_v16 = vmul.bf16 %v5145_v12, %v319_v63  ;;  %v5150_v29 = vld [vmem:[#allocation7] sm:$0xff]  }
  0x8c   : > { %v4142_v3 = vcombine.low %v498_v61, %v498_v61  ;;  %v4143_v4 = vcombine.high %v498_v61, %v498_v61  ;;  %v344_v7 = vpack.c.bf16 %v4109_v2, %v4108_v59  ;;  %v4174_v9 = vcombine.low %v722_v5, %v722_v5  ;;  %v303_v17 = vld [vmem:[%s5722_s11 + $0x8] sm:$0xff]  ;;  %v5151_v30 = vld [vmem:[#allocation7 + $0x40] sm:$0xff]   ;;  %v5173_v53 = vld [vmem:[#allocation12 + $0x38] sm:$0xff]  }
  0x8d   : > { %v5128_v1 = vld [vmem:[#allocation2 + $0x40] ss:$8 sps:$4 sm:$0xff]   ;;  %v4175_v10 = vcombine.high %v722_v5, %v722_v5  ;;  %v318_v23 = vpack.c.bf16 %v303_v17, %v302_v15  ;;  %v5174_v54 = vld [vmem:[#allocation12 + $0x78] sm:$0xff]   ;;  %v5161_v57 = vld [vmem:[#allocation12 + $0x10] sm:$0xff]  }
  0x8e   : > { %965 = vmatpush1.bf16.msra.mxu0 %v5121_v39  ;;  %1143 = vmatpush1.bf16.msra.mxu1 %v5121_v39  ;;  %v5126_v60 = vld [vmem:[#allocation2 + $0x44] ss:$8 sps:$4 sm:$0xff]   ;;  %564 = vst [vmem:[#allocation2 + $0x20] sm:$0xf] %v4142_v3  ;;  %565 = vst [vmem:[#allocation2 + $0x28] sm:$0xf] %v4143_v4  ;;  %v489_v13 = vmul.bf16 %v5144_v8, %v344_v7  ;;  %v713_v22 = vmul.bf16 %v5146_v14, %v344_v7 }
  0x8f   : > { %966 = vmatprep.subr.bf16.mxu0 %v5126_v60  ;;  %1144 = vmatprep.subr.bf16.mxu1 %v5126_v60  ;;  %788 = vst [vmem:[#allocation2 + $0x24] sm:$0xf] %v4174_v9  ;;  %789 = vst [vmem:[#allocation2 + $0x2c] sm:$0xf] %v4175_v10  ;;  %v4107_v19 = vld [vmem:[%s5722_s11 + $0x88] sm:$0xff]  ;;  %v415_v33 = vmul.bf16 %v5150_v29, %v318_v23  ;;  %v5152_v34 = vld [vmem:[#allocation7 + $0x40] sm:$0xff]  }
  0x90   : > { %v497_v21 = vsub.bf16 %v416_v11, %v489_v13  ;;  %v5135_v24 = vld [vmem:[#allocation2 + $0x30] ss:$8 sps:$4 sm:$0xff]   ;;  %v343_v25 = vpack.c.bf16 %v4107_v19, %v4106_v18  ;;  %v721_v28 = vadd.bf16 %v713_v22, %v641_v16  ;;  %v5153_v36 = vld [vmem:[#allocation7] sm:$0xff]   ;;  %v640_v38 = vmul.bf16 %v5152_v34, %v318_v23  ;;  %v5159_v55 = vld [vmem:[#allocation12 + $0x8] sm:$0xff]  }
  0x91   : > { %v5133_v20 = vld [vmem:[#allocation2 + $0x34] ss:$8 sps:$4 sm:$0xff]   ;;  %v5157_v50 = vld [vmem:[#allocation12] sm:$0xff]   ;;  %v5160_v56 = vld [vmem:[#allocation12 + $0x48] sm:$0xff]  }
  0x92   : > { %967 = vmatpush1.bf16.msra.mxu0 %v5128_v1  ;;  %1145 = vmatpush1.bf16.msra.mxu1 %v5128_v1  ;;  %v4140_v26 = vcombine.low %v497_v21, %v497_v21  ;;  %v4141_v27 = vcombine.high %v497_v21, %v497_v21  ;;  %v4172_v31 = vcombine.low %v721_v28, %v721_v28  ;;  %v5158_v52 = vld [vmem:[#allocation12 + $0x40] sm:$0xff]   ;;  %v5162_v58 = vld [vmem:[#allocation12 + $0x50] sm:$0xff]   ;;  %v5163_v59 = vld [vmem:[#allocation12 + $0x18] sm:$0xff]  }
  0x93   : > { %968 = vmatprep.subr.bf16.mxu0 %v5133_v20  ;;  %1146 = vmatprep.subr.bf16.mxu1 %v5133_v20  ;;  %v4173_v32 = vcombine.high %v721_v28, %v721_v28  ;;  %v488_v35 = vmul.bf16 %v5151_v30, %v343_v25  ;;  %v712_v41 = vmul.bf16 %v5153_v36, %v343_v25  ;;  %v5164_v60 = vld [vmem:[#allocation12 + $0x58] sm:$0xff]   ;;  %v5165_v61 = vld [vmem:[#allocation12 + $0x20] sm:$0xff]   ;;  %v5167_v63 = vld [vmem:[#allocation12 + $0x28] sm:$0xff]  }
  0x94   : > { %562 = vst [vmem:[#allocation2 + $0x10] sm:$0xf] %v4140_v26  ;;  %563 = vst [vmem:[#allocation2 + $0x18] sm:$0xf] %v4141_v27  ;;  %v5166_v62 = vld [vmem:[#allocation12 + $0x60] sm:$0xff]   ;;  %v5168_v1 = vld [vmem:[#allocation12 + $0x68] sm:$0xff]  }
  0x95   : > { %786 = vst [vmem:[#allocation2 + $0x14] sm:$0xf] %v4172_v31  ;;  %787 = vst [vmem:[#allocation2 + $0x1c] sm:$0xf] %v4173_v32  ;;  %v5142_v39 = vld [vmem:[#allocation2 + $0x20] ss:$8 sps:$4 sm:$0xff]   ;;  %v496_v40 = vsub.bf16 %v415_v33, %v488_v35  ;;  %v720_v44 = vadd.bf16 %v712_v41, %v640_v38 }
  0x96   : > { %969 = vmatpush1.bf16.msra.mxu0 %v5135_v24  ;;  %1147 = vmatpush1.bf16.msra.mxu1 %v5135_v24  ;;  %v5140_v37 = vld [vmem:[#allocation2 + $0x24] ss:$8 sps:$4 sm:$0xff]   ;;  %v5169_v2 = vld [vmem:[#allocation12 + $0x30] sm:$0xff]   ;;  %v5171_v4 = vld [vmem:[#allocation12 + $0x38] sm:$0xff]  }
  0x97   : > { %970 = vmatprep.subr.bf16.mxu0 %v5140_v37  ;;  %1148 = vmatprep.subr.bf16.mxu1 %v5140_v37  ;;  %v4138_v42 = vcombine.low %v496_v40, %v496_v40  ;;  %v4139_v43 = vcombine.high %v496_v40, %v496_v40  ;;  %v4170_v45 = vcombine.low %v720_v44, %v720_v44  ;;  %v5170_v3 = vld [vmem:[#allocation12 + $0x70] sm:$0xff]   ;;  %v5172_v5 = vld [vmem:[#allocation12 + $0x78] sm:$0xff]   ;;  %v5177_v8 = vld [vmem:[#allocation12 + $0x28] sm:$0xff]  }
  0x98   : > { %v4171_v46 = vcombine.high %v720_v44, %v720_v44  ;;  %v5175_v6 = vld [vmem:[#allocation12 + $0x30] sm:$0xff]   ;;  %v5178_v9 = vld [vmem:[#allocation12 + $0x68] sm:$0xff]   ;;  %v5179_v10 = vld [vmem:[#allocation12 + $0x20] sm:$0xff]  }
  0x99   : > { %560 = vst [vmem:[#allocation2] sm:$0xf] %v4138_v42  ;;  %561 = vst [vmem:[#allocation2 + $0x8] sm:$0xf] %v4139_v43  ;;  %v5176_v7 = vld [vmem:[#allocation12 + $0x70] sm:$0xff]   ;;  %v5180_v11 = vld [vmem:[#allocation12 + $0x60] sm:$0xff]  }
  0x9a   : > { %971 = vmatpush1.bf16.msra.mxu0 %v5142_v39  ;;  %1149 = vmatpush1.bf16.msra.mxu1 %v5142_v39  ;;  %784 = vst [vmem:[#allocation2 + $0x4] sm:$0xf] %v4170_v45  ;;  %785 = vst [vmem:[#allocation2 + $0xc] sm:$0xf] %v4171_v46  ;;  %v5181_v12 = vld [vmem:[#allocation12 + $0x18] sm:$0xff]   ;;  %v5183_v14 = vld [vmem:[#allocation12 + $0x10] sm:$0xff]  }
  0x9b   : > { %v5149_v48 = vld [vmem:[#allocation2 + $0x10] ss:$8 sps:$4 sm:$0xff]   ;;  %v5185_v16 = vld [vmem:[#allocation12 + $0x8] sm:$0xff]   ;;  %v5188_v18 = vld [vmem:[#allocation12] sm:$0xff]  }
  0x9c   : > { %v5147_v47 = vld [vmem:[#allocation2 + $0x14] ss:$8 sps:$4 sm:$0xff]   ;;  %v5187_v17 = vld [vmem:[#allocation12 + $0x48] sm:$0xff]   ;;  %v5189_v19 = vld [vmem:[#allocation12 + $0x40] sm:$0xff]  }
  0x9d   : > { %972 = vmatprep.subr.bf16.mxu0 %v5147_v47  ;;  %1150 = vmatprep.subr.bf16.mxu1 %v5147_v47  ;;  %v5182_v13 = vld [vmem:[#allocation12 + $0x58] sm:$0xff]   ;;  %v5184_v15 = vld [vmem:[#allocation12 + $0x50] sm:$0xff]  }
  0x9e   : > { %973 = vmatpush1.bf16.msra.mxu0 %v5149_v48  ;;  %1151 = vmatpush1.bf16.msra.mxu1 %v5149_v48 }
  0xa0   : > { %v5156_v51 = vld [vmem:[#allocation2] ss:$8 sps:$4 sm:$0xff]  }
  0xa1   : > { %v5154_v49 = vld [vmem:[#allocation2 + $0x4] ss:$8 sps:$4 sm:$0xff]  }
  0xa2   : > { %974 = vmatprep.subr.bf16.mxu0 %v5154_v49  ;;  %1152 = vmatprep.subr.bf16.mxu1 %v5154_v49 }
  0xa3   : > { %975 = vmatpush1.bf16.msra.mxu0 %v5156_v51  ;;  %1153 = vmatpush1.bf16.msra.mxu1 %v5156_v51 }
  0xa4   : > { %4815 = vmatprep.subr.bf16.mxu0 %v5173_v53  ;;  %4863 = vmatprep.subr.bf16.mxu1 %v5174_v54 }
  0xa6   : > { %993 = vmatmul.mubr.bf16.vlgmr.msra.gmra.mxu0 %v5157_v50  ;;  %1171 = vmatmul.mubr.bf16.vlgmr.msra.gmra.mxu1 %v5158_v52 }
  0xa7   : > { %1002 = vmatprep.mubr.bf16.mxu0 %v5524_v0  ;;  %1180 = vmatprep.mubr.bf16.mxu1 %v5524_v0 }
  0xa8   : > { %4816 = vmatpush3.bf16.msra.mxu0 %v5173_v53  ;;  %4864 = vmatpush3.bf16.msra.mxu1 %v5174_v54 }
  0xa9   : > { %4817 = vmatprep.subr.bf16.mxu0 %v5175_v6  ;;  %4865 = vmatprep.subr.bf16.mxu1 %v5176_v7 }
  0xac   : > { %4818 = vmatpush3.bf16.msra.mxu0 %v5175_v6  ;;  %4866 = vmatpush3.bf16.msra.mxu1 %v5176_v7 }
  0xad   : > { %4819 = vmatprep.subr.bf16.mxu0 %v5177_v8  ;;  %4867 = vmatprep.subr.bf16.mxu1 %v5178_v9 }
  0xae   : > { %1003 = vmatmul.mubr.bf16.gmra.mxu0 %v5159_v55  ;;  %1181 = vmatmul.mubr.bf16.gmra.mxu1 %v5160_v56 }
  0xaf   : > { %1012 = vmatprep.mubr.bf16.mxu0 %v5524_v0  ;;  %1190 = vmatprep.mubr.bf16.mxu1 %v5524_v0 }
  0xb0   : > { %4820 = vmatpush3.bf16.msra.mxu0 %v5177_v8  ;;  %4868 = vmatpush3.bf16.msra.mxu1 %v5178_v9 }
  0xb1   : > { %4821 = vmatprep.subr.bf16.mxu0 %v5179_v10  ;;  %4869 = vmatprep.subr.bf16.mxu1 %v5180_v11 }
  0xb4   : > { %4822 = vmatpush3.bf16.msra.mxu0 %v5179_v10  ;;  %4870 = vmatpush3.bf16.msra.mxu1 %v5180_v11 }
  0xb5   : > { %4823 = vmatprep.subr.bf16.mxu0 %v5181_v12  ;;  %4871 = vmatprep.subr.bf16.mxu1 %v5182_v13 }
  0xb6   : > { %1013 = vmatmul.mubr.bf16.gmra.mxu0 %v5161_v57  ;;  %1191 = vmatmul.mubr.bf16.gmra.mxu1 %v5162_v58 }
  0xb7   : > { %1022 = vmatprep.mubr.bf16.mxu0 %v5524_v0  ;;  %1200 = vmatprep.mubr.bf16.mxu1 %v5524_v0 }
  0xb8   : > { %4824 = vmatpush3.bf16.msra.mxu0 %v5181_v12  ;;  %4872 = vmatpush3.bf16.msra.mxu1 %v5182_v13 }
  0xb9   : > { %4825 = vmatprep.subr.bf16.mxu0 %v5183_v14  ;;  %4873 = vmatprep.subr.bf16.mxu1 %v5184_v15 }
  0xbc   : > { %4826 = vmatpush3.bf16.msra.mxu0 %v5183_v14  ;;  %4874 = vmatpush3.bf16.msra.mxu1 %v5184_v15 }
  0xbd   : > { %4827 = vmatprep.subr.bf16.mxu0 %v5185_v16  ;;  %4875 = vmatprep.subr.bf16.mxu1 %v5187_v17 }
  0xbe   : > { %1023 = vmatmul.mubr.bf16.gmra.mxu0 %v5163_v59  ;;  %1201 = vmatmul.mubr.bf16.gmra.mxu1 %v5164_v60 }
  0xbf   : > { %1032 = vmatprep.mubr.bf16.mxu0 %v5524_v0  ;;  %1210 = vmatprep.mubr.bf16.mxu1 %v5524_v0 }
  0xc0   : > { %4828 = vmatpush3.bf16.msra.mxu0 %v5185_v16  ;;  %4876 = vmatpush3.bf16.msra.mxu1 %v5187_v17 }
  0xc1   : > { %4829 = vmatprep.subr.bf16.mxu0 %v5188_v18  ;;  %4877 = vmatprep.subr.bf16.mxu1 %v5189_v19 }
  0xc4   : > { %4830 = vmatpush3.bf16.msra.mxu0 %v5188_v18  ;;  %4878 = vmatpush3.bf16.msra.mxu1 %v5189_v19 }
  0xc6   : > { %1033 = vmatmul.mubr.bf16.gmra.mxu0 %v5165_v61  ;;  %1211 = vmatmul.mubr.bf16.gmra.mxu1 %v5166_v62 }
  0xc7   : > { %1042 = vmatprep.mubr.bf16.mxu0 %v5524_v0  ;;  %1220 = vmatprep.mubr.bf16.mxu1 %v5524_v0 }
  0xce   : > { %1043 = vmatmul.mubr.bf16.gmra.mxu0 %v5167_v63  ;;  %1221 = vmatmul.mubr.bf16.gmra.mxu1 %v5168_v1 }
  0xcf   : > { %1052 = vmatprep.mubr.bf16.mxu0 %v5524_v0  ;;  %1230 = vmatprep.mubr.bf16.mxu1 %v5524_v0 }
  0xd6   : > { %1053 = vmatmul.mubr.bf16.gmra.mxu0 %v5169_v2  ;;  %1231 = vmatmul.mubr.bf16.gmra.mxu1 %v5170_v3 }
  0xd7   : > { %1062 = vmatprep.mubr.bf16.mxu0 %v5524_v0  ;;  %1240 = vmatprep.mubr.bf16.mxu1 %v5524_v0 }
  0xde   : > { %1063 = vmatmul.mubr.bf16.gmra.mxu0 %v5171_v4  ;;  %1241 = vmatmul.mubr.bf16.gmra.mxu1 %v5172_v5 }
 0x166   : > { %v994_v20 = vpop.f32.mrf.mxu0  ;;  %v1172_v21 = vpop.f32.mrf.mxu1 }
 0x168   : > { %v996_v22 = vpop.f32.mrf.mxu0  ;;  %v1174_v23 = vpop.f32.mrf.mxu1 }
 0x169   : > { %v1347_v28 = vadd.f32 %v1172_v21, %v996_v22  ;;  %v1251_v29 = vsub.f32 %v994_v20, %v1174_v23 }
 0x16a   : > { %v998_v24 = vpop.f32.mrf.mxu0  ;;  %v1176_v25 = vpop.f32.mrf.mxu1 }
 0x16c   : > { %v1000_v26 = vpop.f32.mrf.mxu0  ;;  %v1178_v27 = vpop.f32.mrf.mxu1 }
 0x16d   : > { %v1348_v30 = vadd.f32 %v1176_v25, %v1000_v26  ;;  %v1252_v31 = vsub.f32 %v998_v24, %v1178_v27 }
 0x16e   : > { %v1004_v32 = vpop.f32.mrf.mxu0  ;;  %v1182_v33 = vpop.f32.mrf.mxu1 }
 0x16f   : > { %v4572_v34 = vpack.c.bf16 %v1348_v30, %v1347_v28  ;;  %v4532_v35 = vpack.c.bf16 %v1252_v31, %v1251_v29 }
 0x170   : > { %v1006_v36 = vpop.f32.mrf.mxu0  ;;  %v1184_v37 = vpop.f32.mrf.mxu1 }
 0x171   : > { %4696 = vst [vmem:[#allocation3 + $0x40] sm:$0xff] %v4572_v34   ;;  %4533 = vst [vmem:[#allocation3] sm:$0xff] %v4532_v35   ;;  %v1349_v42 = vadd.f32 %v1182_v33, %v1006_v36  ;;  %v1253_v43 = vsub.f32 %v1004_v32, %v1184_v37 }
 0x172   : > { %v1008_v38 = vpop.f32.mrf.mxu0  ;;  %v1186_v39 = vpop.f32.mrf.mxu1 }
 0x174   : > { %v1010_v40 = vpop.f32.mrf.mxu0  ;;  %v1188_v41 = vpop.f32.mrf.mxu1 }
 0x175   : > { %v1350_v44 = vadd.f32 %v1186_v39, %v1010_v40  ;;  %v1254_v45 = vsub.f32 %v1008_v38, %v1188_v41 }
 0x176   : > { %v1014_v46 = vpop.f32.mrf.mxu0  ;;  %v1192_v47 = vpop.f32.mrf.mxu1 }
 0x177   : > { %v4577_v48 = vpack.c.bf16 %v1350_v44, %v1349_v42  ;;  %v4537_v49 = vpack.c.bf16 %v1254_v45, %v1253_v43 }
 0x178   : > { %v1016_v50 = vpop.f32.mrf.mxu0  ;;  %v1194_v51 = vpop.f32.mrf.mxu1  ;;  %v5186_v52 = vld [vmem:[#allocation3] sm:$0xff]  }
 0x179   : > { %4697 = vst [vmem:[#allocation3 + $0x48] sm:$0xff] %v4577_v48   ;;  %4689 = vst [vmem:[#allocation3 + $0x8] sm:$0xff] %v4537_v49   ;;  %4831 = vmatprep.mubr.bf16.mxu0 %v5186_v52  ;;  %4879 = vmatprep.mubr.bf16.mxu1 %v5186_v52  ;;  %v1351_v57 = vadd.f32 %v1192_v47, %v1016_v50  ;;  %v1255_v58 = vsub.f32 %v1014_v46, %v1194_v51 }
 0x17a   : > { %v1018_v53 = vpop.f32.mrf.mxu0  ;;  %v1196_v54 = vpop.f32.mrf.mxu1 }
 0x17c   : > { %v1020_v55 = vpop.f32.mrf.mxu0  ;;  %v1198_v56 = vpop.f32.mrf.mxu1 }
 0x17d   : > { %v1352_v59 = vadd.f32 %v1196_v54, %v1020_v55  ;;  %v1256_v60 = vsub.f32 %v1018_v53, %v1198_v56 }
 0x17e   : > { %v1024_v61 = vpop.f32.mrf.mxu0  ;;  %v1202_v62 = vpop.f32.mrf.mxu1 }
 0x17f   : > { %v4582_v63 = vpack.c.bf16 %v1352_v59, %v1351_v57  ;;  %v4542_v1 = vpack.c.bf16 %v1256_v60, %v1255_v58 }
 0x180   : > { %v1026_v2 = vpop.f32.mrf.mxu0  ;;  %v1204_v3 = vpop.f32.mrf.mxu1  ;;  %v5190_v4 = vld [vmem:[#allocation3 + $0x8] sm:$0xff]  }
 0x181   : > { %4698 = vst [vmem:[#allocation3 + $0x50] sm:$0xff] %v4582_v63   ;;  %4690 = vst [vmem:[#allocation3 + $0x10] sm:$0xff] %v4542_v1   ;;  %4832 = vmatmul.mubr.bf16.vlgmr.msra.gmra.mxu0 %v5190_v4  ;;  %4880 = vmatmul.mubr.bf16.vlgmr.msra.gmra.mxu1 %v5190_v4  ;;  %v1353_v9 = vadd.f32 %v1202_v62, %v1026_v2  ;;  %v1257_v10 = vsub.f32 %v1024_v61, %v1204_v3 }
 0x182   : > { %v1028_v5 = vpop.f32.mrf.mxu0  ;;  %v1206_v6 = vpop.f32.mrf.mxu1 }
 0x184   : > { %v1030_v7 = vpop.f32.mrf.mxu0  ;;  %v1208_v8 = vpop.f32.mrf.mxu1 }
 0x185   : > { %v1354_v11 = vadd.f32 %v1206_v6, %v1030_v7  ;;  %v1258_v12 = vsub.f32 %v1028_v5, %v1208_v8 }
 0x186   : > { %v1034_v13 = vpop.f32.mrf.mxu0  ;;  %v1212_v14 = vpop.f32.mrf.mxu1 }
 0x187   : > { %v4587_v15 = vpack.c.bf16 %v1354_v11, %v1353_v9  ;;  %v4547_v16 = vpack.c.bf16 %v1258_v12, %v1257_v10 }
 0x188   : > { %v1036_v17 = vpop.f32.mrf.mxu0  ;;  %v1214_v18 = vpop.f32.mrf.mxu1  ;;  %v5191_v19 = vld [vmem:[#allocation3 + $0x10] sm:$0xff]  }
 0x189   : > { %4699 = vst [vmem:[#allocation3 + $0x58] sm:$0xff] %v4587_v15   ;;  %4691 = vst [vmem:[#allocation3 + $0x18] sm:$0xff] %v4547_v16   ;;  %4835 = vmatprep.mubr.bf16.mxu0 %v5191_v19  ;;  %4883 = vmatprep.mubr.bf16.mxu1 %v5191_v19  ;;  %v1355_v24 = vadd.f32 %v1212_v14, %v1036_v17  ;;  %v1259_v25 = vsub.f32 %v1034_v13, %v1214_v18  ;;  %v5197_v14 = vld [vmem:[#allocation3 + $0x40] sm:$0xff]   ;;  %v5198_v15 = vld [vmem:[#allocation3 + $0x48] sm:$0xff]  }
 0x18a   : > { %v1038_v20 = vpop.f32.mrf.mxu0  ;;  %v1216_v21 = vpop.f32.mrf.mxu1  ;;  %v5199_v16 = vld [vmem:[#allocation3 + $0x50] sm:$0xff]  }
 0x18c   : > { %v1040_v22 = vpop.f32.mrf.mxu0  ;;  %v1218_v23 = vpop.f32.mrf.mxu1 }
 0x18d   : > { %v1356_v26 = vadd.f32 %v1216_v21, %v1040_v22  ;;  %v1260_v27 = vsub.f32 %v1038_v20, %v1218_v23 }
 0x18e   : > { %v1044_v28 = vpop.f32.mrf.mxu0  ;;  %v1222_v29 = vpop.f32.mrf.mxu1 }
 0x18f   : > { %v4592_v30 = vpack.c.bf16 %v1356_v26, %v1355_v24  ;;  %v4552_v31 = vpack.c.bf16 %v1260_v27, %v1259_v25 }
 0x190   : > { %v1046_v32 = vpop.f32.mrf.mxu0  ;;  %v1224_v33 = vpop.f32.mrf.mxu1  ;;  %v5192_v34 = vld [vmem:[#allocation3 + $0x18] sm:$0xff]  }
 0x191   : > { %4700 = vst [vmem:[#allocation3 + $0x60] sm:$0xff] %v4592_v30   ;;  %4692 = vst [vmem:[#allocation3 + $0x20] sm:$0xff] %v4552_v31   ;;  %4836 = vmatmul.mubr.bf16.gmra.mxu0 %v5192_v34  ;;  %4884 = vmatmul.mubr.bf16.gmra.mxu1 %v5192_v34  ;;  %v1357_v39 = vadd.f32 %v1222_v29, %v1046_v32  ;;  %v1261_v40 = vsub.f32 %v1044_v28, %v1224_v33  ;;  %v5200_v17 = vld [vmem:[#allocation3 + $0x58] sm:$0xff]  }
 0x192   : > { %v1048_v35 = vpop.f32.mrf.mxu0  ;;  %v1226_v36 = vpop.f32.mrf.mxu1 }
 0x194   : > { %v1050_v37 = vpop.f32.mrf.mxu0  ;;  %v1228_v38 = vpop.f32.mrf.mxu1 }
 0x195   : > { %v1358_v41 = vadd.f32 %v1226_v36, %v1050_v37  ;;  %v1262_v42 = vsub.f32 %v1048_v35, %v1228_v38 }
 0x196   : > { %v1054_v43 = vpop.f32.mrf.mxu0  ;;  %v1232_v44 = vpop.f32.mrf.mxu1 }
 0x197   : > { %v4597_v45 = vpack.c.bf16 %v1358_v41, %v1357_v39  ;;  %v4557_v46 = vpack.c.bf16 %v1262_v42, %v1261_v40 }
 0x198   : > { %v1056_v47 = vpop.f32.mrf.mxu0  ;;  %v1234_v48 = vpop.f32.mrf.mxu1  ;;  %v5193_v49 = vld [vmem:[#allocation3 + $0x20] sm:$0xff]  }
 0x199   : > { %4701 = vst [vmem:[#allocation3 + $0x68] sm:$0xff] %v4597_v45   ;;  %4693 = vst [vmem:[#allocation3 + $0x28] sm:$0xff] %v4557_v46   ;;  %4839 = vmatprep.mubr.bf16.mxu0 %v5193_v49  ;;  %4887 = vmatprep.mubr.bf16.mxu1 %v5193_v49  ;;  %v1359_v54 = vadd.f32 %v1232_v44, %v1056_v47  ;;  %v1263_v55 = vsub.f32 %v1054_v43, %v1234_v48  ;;  %v5201_v18 = vld [vmem:[#allocation3 + $0x60] sm:$0xff]  }
 0x19a   : > { %v1058_v50 = vpop.f32.mrf.mxu0  ;;  %v1236_v51 = vpop.f32.mrf.mxu1 }
 0x19c   : > { %v1060_v52 = vpop.f32.mrf.mxu0  ;;  %v1238_v53 = vpop.f32.mrf.mxu1 }
 0x19d   : > { %v1360_v56 = vadd.f32 %v1236_v51, %v1060_v52  ;;  %v1264_v57 = vsub.f32 %v1058_v50, %v1238_v53 }
 0x19e   : > { %v1064_v58 = vpop.f32.mrf.mxu0  ;;  %v1242_v59 = vpop.f32.mrf.mxu1 }
 0x19f   : > { %v4602_v60 = vpack.c.bf16 %v1360_v56, %v1359_v54  ;;  %v4562_v61 = vpack.c.bf16 %v1264_v57, %v1263_v55 }
 0x1a0   : > { %v1066_v62 = vpop.f32.mrf.mxu0  ;;  %v1244_v63 = vpop.f32.mrf.mxu1  ;;  %v5194_v1 = vld [vmem:[#allocation3 + $0x28] sm:$0xff]  }
 0x1a1   : > { %4702 = vst [vmem:[#allocation3 + $0x70] sm:$0xff] %v4602_v60   ;;  %4694 = vst [vmem:[#allocation3 + $0x30] sm:$0xff] %v4562_v61   ;;  %4840 = vmatmul.mubr.bf16.gmra.mxu0 %v5194_v1  ;;  %4888 = vmatmul.mubr.bf16.gmra.mxu1 %v5194_v1  ;;  %v1361_v6 = vadd.f32 %v1242_v59, %v1066_v62  ;;  %v1265_v7 = vsub.f32 %v1064_v58, %v1244_v63  ;;  %v5202_v19 = vld [vmem:[#allocation3 + $0x68] sm:$0xff]  }
 0x1a2   : > { %v1068_v2 = vpop.f32.mrf.mxu0  ;;  %v1246_v3 = vpop.f32.mrf.mxu1  ;;  %v5205_v59 = vld [vmem:[#allocation9 + $0x48] sm:$0xff]  }
 0x1a3   : > { %v5206_v1 = vld [vmem:[#allocation9 + $0x8] sm:$0xff]  }
 0x1a4   : > { %v1070_v4 = vpop.f32.mrf.mxu0  ;;  %v1248_v5 = vpop.f32.mrf.mxu1 }
 0x1a5   : > { %v1362_v8 = vadd.f32 %v1246_v3, %v1070_v4  ;;  %v1266_v9 = vsub.f32 %v1068_v2, %v1248_v5  ;;  %v5207_v3 = vld [vmem:[#allocation9 + $0x8] sm:$0xff]  }
 0x1a6   : > { %v5208_v4 = vld [vmem:[#allocation9 + $0x48] sm:$0xff]  }
 0x1a7   : > { %v4607_v10 = vpack.c.bf16 %v1362_v8, %v1361_v6  ;;  %v4567_v11 = vpack.c.bf16 %v1266_v9, %v1265_v7 }
 0x1a8   : > { %v5195_v12 = vld [vmem:[#allocation3 + $0x30] sm:$0xff]  }
 0x1a9   : > { %4703 = vst [vmem:[#allocation3 + $0x78] sm:$0xff] %v4607_v10   ;;  %4695 = vst [vmem:[#allocation3 + $0x38] sm:$0xff] %v4567_v11   ;;  %4843 = vmatprep.mubr.bf16.mxu0 %v5195_v12  ;;  %4891 = vmatprep.mubr.bf16.mxu1 %v5195_v12  ;;  %v5203_v20 = vld [vmem:[#allocation3 + $0x70] sm:$0xff]   ;;  %v5209_v10 = vld [vmem:[#allocation9 + $0x40] sm:$0xff]  }
 0x1b0   : > { %v5196_v13 = vld [vmem:[#allocation3 + $0x38] sm:$0xff]  }
 0x1b1   : > { %4844 = vmatmul.mubr.bf16.gmra.mxu0 %v5196_v13  ;;  %4892 = vmatmul.mubr.bf16.gmra.mxu1 %v5196_v13  ;;  %v5204_v21 = vld [vmem:[#allocation3 + $0x78] sm:$0xff]  }
 0x1b2   : > { %4847 = vmatprep.mubr.bf16.mxu0 %v5197_v14  ;;  %4895 = vmatprep.mubr.bf16.mxu1 %v5197_v14  ;;  %v5210_v14 = vld [vmem:[#allocation9] sm:$0xff]  }
 0x1b9   : > { %4848 = vmatmul.mubr.bf16.gmra.mxu0 %v5198_v15  ;;  %4896 = vmatmul.mubr.bf16.gmra.mxu1 %v5198_v15  ;;  %v5211_v15 = vld [vmem:[#allocation9] sm:$0xff]  }
 0x1ba   : > { %4851 = vmatprep.mubr.bf16.mxu0 %v5199_v16  ;;  %4899 = vmatprep.mubr.bf16.mxu1 %v5199_v16  ;;  %v5212_v16 = vld [vmem:[#allocation9 + $0x40] sm:$0xff]  }
 0x1c1   : > { %4852 = vmatmul.mubr.bf16.gmra.mxu0 %v5200_v17  ;;  %4900 = vmatmul.mubr.bf16.gmra.mxu1 %v5200_v17 }
 0x1c2   : > { %4855 = vmatprep.mubr.bf16.mxu0 %v5201_v18  ;;  %4903 = vmatprep.mubr.bf16.mxu1 %v5201_v18 }
 0x1c9   : > { %4856 = vmatmul.mubr.bf16.gmra.mxu0 %v5202_v19  ;;  %4904 = vmatmul.mubr.bf16.gmra.mxu1 %v5202_v19 }
 0x1ca   : > { %4859 = vmatprep.mubr.bf16.mxu0 %v5203_v20  ;;  %4907 = vmatprep.mubr.bf16.mxu1 %v5203_v20 }
 0x1d1   : > { %4860 = vmatmul.mubr.bf16.gmra.mxu0 %v5204_v21  ;;  %4908 = vmatmul.mubr.bf16.gmra.mxu1 %v5204_v21 }
 0x1d2   : > { %2887 = vmatprep.mubr.bf16.mxu1 %v5524_v0  ;;  %2710 = vmatprep.mubr.bf16.mxu0 %v5524_v0 }
 0x241   : > { %v4833_v22 = vpop.f32.mrf.mxu0  ;;  %v4881_v23 = vpop.f32.mrf.mxu1 }
 0x243   : > { %v5786_v24 = vpop.f32.mrf.mxu0  ;;  %v1894_v25 = vpop.f32.mrf.mxu1 }
 0x245   : > { %v4834_v26 = vpop.f32.mrf.mxu0  ;;  %v4882_v27 = vpop.f32.mrf.mxu1 }
 0x247   : > { %v1672_v28 = vpop.f32.mrf.mxu0  ;;  %v1897_v29 = vpop.f32.mrf.mxu1 }
 0x251   : > { %v5788_v30 = vpop.f32.mrf.mxu0  ;;  %v4885_v31 = vpop.f32.mrf.mxu1 }
 0x253   : > { %v5790_v32 = vpop.f32.mrf.mxu0  ;;  %v5792_v33 = vpop.f32.mrf.mxu1 }
 0x255   : > { %v5794_v34 = vpop.f32.mrf.mxu0  ;;  %v5796_v35 = vpop.f32.mrf.mxu1 }
 0x257   : > { %v5798_v36 = vpop.f32.mrf.mxu0  ;;  %v5800_v37 = vpop.f32.mrf.mxu1 }
 0x261   : > { %v5802_v38 = vpop.f32.mrf.mxu0  ;;  %v5804_v39 = vpop.f32.mrf.mxu1 }
 0x263   : > { %v5806_v40 = vpop.f32.mrf.mxu0  ;;  %v5808_v41 = vpop.f32.mrf.mxu1 }
 0x265   : > { %v5810_v42 = vpop.f32.mrf.mxu0  ;;  %v5812_v43 = vpop.f32.mrf.mxu1 }
 0x267   : > { %v5814_v44 = vpop.f32.mrf.mxu0  ;;  %v5816_v45 = vpop.f32.mrf.mxu1 }
 0x271   : > { %v5818_v46 = vpop.f32.mrf.mxu0  ;;  %v5820_v47 = vpop.f32.mrf.mxu1 }
 0x273   : > { %v5822_v48 = vpop.f32.mrf.mxu0  ;;  %v5824_v49 = vpop.f32.mrf.mxu1 }
 0x275   : > { %v5826_v50 = vpop.f32.mrf.mxu0  ;;  %v5828_v51 = vpop.f32.mrf.mxu1 }
 0x277   : > { %v5830_v52 = vpop.f32.mrf.mxu0  ;;  %v5832_v53 = vpop.f32.mrf.mxu1 }
 0x279   : > { %v4849_v54 = vpop.f32.mrf.mxu0  ;;  %v4897_v55 = vpop.f32.mrf.mxu1 }
 0x27a   : > { %v2039_v61 = vadd.f32 %v4881_v23, %v4849_v54  ;;  %v2023_v62 = vsub.f32 %v4833_v22, %v4897_v55 }
 0x27b   : > { %v1733_v56 = vpop.f32.mrf.mxu0  ;;  %v1958_v57 = vpop.f32.mrf.mxu1 }
 0x27c   : > { %v2037_v12 = vadd.f32 %v1894_v25, %v1733_v56  ;;  %v2021_v13 = vsub.f32 %v5786_v24, %v1958_v57 }
 0x27d   : > { %v4850_v58 = vpop.f32.mrf.mxu0  ;;  %v4898_v60 = vpop.f32.mrf.mxu1 }
 0x27e   : > { %v2040_v63 = vadd.f32 %v4882_v27, %v4850_v58  ;;  %v2024_v2 = vsub.f32 %v4834_v26, %v4898_v60 }
 0x27f   : > { %v1736_v5 = vpop.f32.mrf.mxu0  ;;  %v1961_v6 = vpop.f32.mrf.mxu1 }
 0x280   : > { %v2062_v7 = vpack.c.bf16 %v2040_v63, %v2039_v61  ;;  %v2054_v8 = vpack.c.bf16 %v2024_v2, %v2023_v62  ;;  %v2038_v9 = vadd.f32 %v1897_v29, %v1736_v5  ;;  %v2022_v11 = vsub.f32 %v1672_v28, %v1961_v6  ;;  %v5213_v5 = vld [vmem:[#allocation9 + $0x58] sm:$0xff]  }
 0x281   : > { %v4853_v17 = vpop.f32.mrf.mxu0  ;;  %v4901_v18 = vpop.f32.mrf.mxu1  ;;  %v5214_v6 = vld [vmem:[#allocation9 + $0x18] sm:$0xff]  }
 0x282   : > { %v2207_v19 = vmul.bf16 %v5205_v59, %v2062_v7  ;;  %v2431_v20 = vmul.bf16 %v5206_v1, %v2062_v7  ;;  %v2134_v21 = vmul.bf16 %v5207_v3, %v2054_v8  ;;  %v2359_v22 = vmul.bf16 %v5208_v4, %v2054_v8 }
 0x283   : > { %v2061_v23 = vpack.c.bf16 %v2038_v9, %v2037_v12  ;;  %v2053_v26 = vpack.c.bf16 %v2022_v11, %v2021_v13  ;;  %v1749_v27 = vpop.f32.mrf.mxu0  ;;  %v1974_v54 = vpop.f32.mrf.mxu1  ;;  %v2043_v58 = vadd.f32 %v4885_v31, %v4853_v17  ;;  %v2027_v25 = vsub.f32 %v5788_v30, %v4901_v18  ;;  %v5216_v11 = vld [vmem:[#allocation9 + $0x58] sm:$0xff]   ;;  %v5217_v13 = vld [vmem:[#allocation9 + $0x50] sm:$0xff]  }
 0x284   : > { %v2215_v55 = vsub.bf16 %v2134_v21, %v2207_v19  ;;  %v2439_v29 = vadd.bf16 %v2431_v20, %v2359_v22  ;;  %v2041_v8 = vadd.f32 %v5792_v33, %v1749_v27  ;;  %v2025_v9 = vsub.f32 %v5790_v32, %v1974_v54  ;;  %v5218_v17 = vld [vmem:[#allocation9 + $0x10] sm:$0xff]  }
 0x285   : > { %v2206_v28 = vmul.bf16 %v5209_v10, %v2061_v23  ;;  %v2430_v24 = vmul.bf16 %v5210_v14, %v2061_v23  ;;  %v2133_v56 = vmul.bf16 %v5211_v15, %v2053_v26  ;;  %v2358_v57 = vmul.bf16 %v5212_v16, %v2053_v26  ;;  %v4854_v60 = vpop.f32.mrf.mxu0  ;;  %v4902_v61 = vpop.f32.mrf.mxu1  ;;  %v5215_v10 = vld [vmem:[#allocation9 + $0x18] sm:$0xff]   ;;  %v5219_v18 = vld [vmem:[#allocation9 + $0x10] sm:$0xff]  }
 0x286   : > { %v4300_v62 = vcombine.low %v2215_v55, %v2215_v55  ;;  %v4301_v59 = vcombine.high %v2215_v55, %v2215_v55  ;;  %v4332_v63 = vcombine.low %v2439_v29, %v2439_v29  ;;  %v4333_v1 = vcombine.high %v2439_v29, %v2439_v29  ;;  %v5220_v19 = vld [vmem:[#allocation9 + $0x50] sm:$0xff]  }
 0x287   : > { %v2214_v2 = vsub.bf16 %v2133_v56, %v2206_v28  ;;  %v2438_v3 = vadd.bf16 %v2430_v24, %v2358_v57  ;;  %v2044_v4 = vadd.f32 %v5796_v35, %v4854_v60  ;;  %v2028_v31 = vsub.f32 %v5794_v34, %v4902_v61  ;;  %v1752_v7 = vpop.f32.mrf.mxu0  ;;  %v1977_v30 = vpop.f32.mrf.mxu1 }
 0x288   : > { %2280 = vst [vmem:[#allocation2 + $0x10] sm:$0xf] %v4300_v62  ;;  %2281 = vst [vmem:[#allocation2 + $0x18] sm:$0xf] %v4301_v59  ;;  %v2042_v12 = vadd.f32 %v5800_v37, %v1752_v7  ;;  %v2026_v35 = vsub.f32 %v5798_v36, %v1977_v30 }
 0x289   : > { %2504 = vst [vmem:[#allocation2 + $0x14] sm:$0xf] %v4332_v63  ;;  %2505 = vst [vmem:[#allocation2 + $0x1c] sm:$0xf] %v4333_v1  ;;  %v4298_v14 = vcombine.low %v2214_v2, %v2214_v2  ;;  %v4299_v15 = vcombine.high %v2214_v2, %v2214_v2  ;;  %v4330_v34 = vcombine.low %v2438_v3, %v2438_v3  ;;  %v4857_v20 = vpop.f32.mrf.mxu0  ;;  %v4905_v21 = vpop.f32.mrf.mxu1  ;;  %v5221_v2 = vld [vmem:[#allocation9 + $0x68] sm:$0xff]  }
 0x28a   : > { %v4331_v16 = vcombine.high %v2438_v3, %v2438_v3  ;;  %v2064_v22 = vpack.c.bf16 %v2044_v4, %v2043_v58  ;;  %v2056_v33 = vpack.c.bf16 %v2028_v31, %v2027_v25  ;;  %v2063_v23 = vpack.c.bf16 %v2042_v12, %v2041_v8  ;;  %v5222_v8 = vld [vmem:[#allocation9 + $0x28] sm:$0xff]  }
 0x28b   : > { %v2055_v32 = vpack.c.bf16 %v2026_v35, %v2025_v9  ;;  %2278 = vst [vmem:[#allocation2] sm:$0xf] %v4298_v14  ;;  %2279 = vst [vmem:[#allocation2 + $0x8] sm:$0xf] %v4299_v15  ;;  %v1765_v37 = vpop.f32.mrf.mxu0  ;;  %v1990_v26 = vpop.f32.mrf.mxu1  ;;  %v2047_v61 = vadd.f32 %v5804_v39, %v4857_v20  ;;  %v2031_v62 = vsub.f32 %v5802_v38, %v4905_v21  ;;  %v5223_v9 = vld [vmem:[#allocation9 + $0x28] sm:$0xff]   ;;  %v5225_v15 = vld [vmem:[#allocation9 + $0x60] sm:$0xff]  }
 0x28c   : > { %2502 = vst [vmem:[#allocation2 + $0x4] sm:$0xf] %v4330_v34  ;;  %2503 = vst [vmem:[#allocation2 + $0xc] sm:$0xf] %v4331_v16  ;;  %v2209_v36 = vmul.bf16 %v5213_v5, %v2064_v22  ;;  %v2433_v27 = vmul.bf16 %v5214_v6, %v2064_v22  ;;  %v2136_v54 = vmul.bf16 %v5215_v10, %v2056_v33  ;;  %v5224_v10 = vld [vmem:[#allocation9 + $0x68] sm:$0xff]   ;;  %v5228_v20 = vld [vmem:[#allocation9 + $0x60] sm:$0xff]  }
 0x28d   : > { %v2361_v55 = vmul.bf16 %v5216_v11, %v2056_v33  ;;  %v2208_v29 = vmul.bf16 %v5217_v13, %v2063_v23  ;;  %v2432_v28 = vmul.bf16 %v5218_v17, %v2063_v23  ;;  %v2135_v24 = vmul.bf16 %v5219_v18, %v2055_v32  ;;  %v4858_v57 = vpop.f32.mrf.mxu0  ;;  %v4906_v60 = vpop.f32.mrf.mxu1  ;;  %v5226_v18 = vld [vmem:[#allocation9 + $0x20] sm:$0xff]  }
 0x28e   : > { %v2360_v56 = vmul.bf16 %v5220_v19, %v2055_v32  ;;  %v2217_v58 = vsub.bf16 %v2136_v54, %v2209_v36  ;;  %v2048_v1 = vadd.f32 %v5812_v43, %v4858_v57  ;;  %v2032_v3 = vsub.f32 %v5810_v42, %v4906_v60  ;;  %v5227_v19 = vld [vmem:[#allocation9 + $0x20] sm:$0xff]   ;;  %v5229_v60 = vld [vmem:[#allocation9 + $0x78] sm:$0xff]  }
 0x28f   : > { %v2441_v25 = vadd.bf16 %v2433_v27, %v2361_v55  ;;  %v2216_v59 = vsub.bf16 %v2135_v24, %v2208_v29  ;;  %v1768_v4 = vpop.f32.mrf.mxu0  ;;  %v1993_v5 = vpop.f32.mrf.mxu1  ;;  %v2045_v16 = vadd.f32 %v5808_v41, %v1765_v37  ;;  %v2029_v17 = vsub.f32 %v5806_v40, %v1990_v26 }
 0x290   : > { %v2440_v63 = vadd.bf16 %v2432_v28, %v2360_v56  ;;  %v4304_v6 = vcombine.low %v2217_v58, %v2217_v58  ;;  %v4305_v31 = vcombine.high %v2217_v58, %v2217_v58  ;;  %v2066_v42 = vpack.c.bf16 %v2048_v1, %v2047_v61  ;;  %v5232_v1 = vld [vmem:[#allocation9 + $0x78] sm:$0xff]  }
 0x291   : > { %v4336_v7 = vcombine.low %v2441_v25, %v2441_v25  ;;  %v4337_v30 = vcombine.high %v2441_v25, %v2441_v25  ;;  %v4302_v11 = vcombine.low %v2216_v59, %v2216_v59  ;;  %v4303_v39 = vcombine.high %v2216_v59, %v2216_v59  ;;  %v4861_v13 = vpop.f32.mrf.mxu0  ;;  %v4909_v35 = vpop.f32.mrf.mxu1 }
 0x292   : > { %v4334_v12 = vcombine.low %v2440_v63, %v2440_v63  ;;  %v4335_v38 = vcombine.high %v2440_v63, %v2440_v63  ;;  %2284 = vst [vmem:[#allocation2 + $0x30] sm:$0xf] %v4304_v6  ;;  %2285 = vst [vmem:[#allocation2 + $0x38] sm:$0xf] %v4305_v31  ;;  %v2058_v43 = vpack.c.bf16 %v2032_v3, %v2031_v62  ;;  %v5231_v63 = vld [vmem:[#allocation9 + $0x38] sm:$0xff]   ;;  %v5233_v31 = vld [vmem:[#allocation9 + $0x70] sm:$0xff]  }
 0x293   : > { %2508 = vst [vmem:[#allocation2 + $0x34] sm:$0xf] %v4336_v7  ;;  %2509 = vst [vmem:[#allocation2 + $0x3c] sm:$0xf] %v4337_v30  ;;  %v2046_v14 = vadd.f32 %v5816_v45, %v1768_v4  ;;  %v2030_v34 = vsub.f32 %v5814_v44, %v1993_v5  ;;  %v1781_v21 = vpop.f32.mrf.mxu0  ;;  %v2006_v22 = vpop.f32.mrf.mxu1  ;;  %v2211_v33 = vmul.bf16 %v5221_v2, %v2066_v42 }
 0x294   : > { %2282 = vst [vmem:[#allocation2 + $0x20] sm:$0xf] %v4302_v11  ;;  %2283 = vst [vmem:[#allocation2 + $0x28] sm:$0xf] %v4303_v39  ;;  %v2435_v23 = vmul.bf16 %v5222_v8, %v2066_v42  ;;  %v2138_v32 = vmul.bf16 %v5223_v9, %v2058_v43  ;;  %v2363_v45 = vmul.bf16 %v5224_v10, %v2058_v43  ;;  %v5234_v11 = vld [vmem:[#allocation9 + $0x30] sm:$0xff]  }
 0x295   : > { %2506 = vst [vmem:[#allocation2 + $0x24] sm:$0xf] %v4334_v12  ;;  %2507 = vst [vmem:[#allocation2 + $0x2c] sm:$0xf] %v4335_v38  ;;  %v2065_v36 = vpack.c.bf16 %v2046_v14, %v2045_v16  ;;  %v2057_v27 = vpack.c.bf16 %v2030_v34, %v2029_v17  ;;  %v2051_v44 = vadd.f32 %v5820_v47, %v4861_v13  ;;  %v4862_v55 = vpop.f32.mrf.mxu0  ;;  %v4910_v29 = vpop.f32.mrf.mxu1  ;;  %v5235_v39 = vld [vmem:[#allocation9 + $0x30] sm:$0xff]  }
 0x296   : > { %v2035_v54 = vsub.f32 %v5818_v46, %v4909_v35  ;;  %v2219_v41 = vsub.bf16 %v2138_v32, %v2211_v33  ;;  %v2443_v37 = vadd.bf16 %v2435_v23, %v2363_v45  ;;  %v2052_v40 = vadd.f32 %v5828_v51, %v4862_v55  ;;  %v5230_v46 = vld [vmem:[#allocation9 + $0x38] sm:$0xff]   ;;  %v5236_v12 = vld [vmem:[#allocation9 + $0x70] sm:$0xff]  }
 0x297   : > { %v2036_v26 = vsub.f32 %v5826_v50, %v4910_v29  ;;  %v2210_v28 = vmul.bf16 %v5225_v15, %v2065_v36  ;;  %v2434_v24 = vmul.bf16 %v5226_v18, %v2065_v36  ;;  %v2137_v56 = vmul.bf16 %v5227_v19, %v2057_v27  ;;  %v1784_v58 = vpop.f32.mrf.mxu0  ;;  %v2009_v25 = vpop.f32.mrf.mxu1 }
 0x298   : > { %v2362_v57 = vmul.bf16 %v5228_v20, %v2057_v27  ;;  %v4308_v61 = vcombine.low %v2219_v41, %v2219_v41  ;;  %v4309_v62 = vcombine.high %v2219_v41, %v2219_v41  ;;  %v4340_v47 = vcombine.low %v2443_v37, %v2443_v37 }
 0x299   : > { %v4341_v59 = vcombine.high %v2443_v37, %v2443_v37  ;;  %v2218_v2 = vsub.bf16 %v2137_v56, %v2210_v28  ;;  %v2068_v4 = vpack.c.bf16 %v2052_v40, %v2051_v44  ;;  %v2060_v51 = vpack.c.bf16 %v2036_v26, %v2035_v54  ;;  %v5249_v40 = vld [vmem:[#allocation2 + $0x30] ss:$8 sps:$4 sm:$0xff]  }
 0x29a   : > { %v2442_v3 = vadd.bf16 %v2434_v24, %v2362_v57  ;;  %2288 = vst [vmem:[#allocation2 + $0x50] sm:$0xf] %v4308_v61  ;;  %2289 = vst [vmem:[#allocation2 + $0x58] sm:$0xf] %v4309_v62  ;;  %v2049_v50 = vadd.f32 %v5824_v49, %v1781_v21  ;;  %v2033_v5 = vsub.f32 %v5822_v48, %v2006_v22  ;;  %v5251_v37 = vld [vmem:[#allocation2 + $0x34] ss:$8 sps:$4 sm:$0xff]  }
 0x29b   : > { %2512 = vst [vmem:[#allocation2 + $0x54] sm:$0xf] %v4340_v47  ;;  %2513 = vst [vmem:[#allocation2 + $0x5c] sm:$0xf] %v4341_v59  ;;  %v2050_v6 = vadd.f32 %v5832_v53, %v1784_v58  ;;  %v2034_v7 = vsub.f32 %v5830_v52, %v2009_v25  ;;  %v4306_v30 = vcombine.low %v2218_v2, %v2218_v2  ;;  %v5252_v28 = vld [vmem:[#allocation2 + $0x20] ss:$8 sps:$4 sm:$0xff]  }
 0x29c   : > { %v4307_v8 = vcombine.high %v2218_v2, %v2218_v2  ;;  %v4338_v9 = vcombine.low %v2442_v3, %v2442_v3  ;;  %v4339_v10 = vcombine.high %v2442_v3, %v2442_v3  ;;  %v2213_v38 = vmul.bf16 %v5229_v60, %v2068_v4  ;;  %v5254_v26 = vld [vmem:[#allocation2 + $0x24] ss:$8 sps:$4 sm:$0xff]   ;;  %v5257_v24 = vld [vmem:[#allocation2 + $0x14] ss:$8 sps:$4 sm:$0xff]   ;;  %v5255_v56 = vld [vmem:[#allocation2 + $0x10] ss:$8 sps:$4 sm:$0xff]  }
 0x29d   : > { %v2437_v13 = vmul.bf16 %v5230_v46, %v2068_v4  ;;  %v2140_v35 = vmul.bf16 %v5231_v63, %v2060_v51  ;;  %v2365_v42 = vmul.bf16 %v5232_v1, %v2060_v51  ;;  %2286 = vst [vmem:[#allocation2 + $0x40] sm:$0xf] %v4306_v30  ;;  %v2067_v48 = vpack.c.bf16 %v2050_v6, %v2049_v50  ;;  %v5260_v57 = vld [vmem:[#allocation2 + $0x4] ss:$8 sps:$4 sm:$0xff]   ;;  %v5258_v60 = vld [vmem:[#allocation2] ss:$8 sps:$4 sm:$0xff]  }
 0x29e   : > { %2287 = vst [vmem:[#allocation2 + $0x48] sm:$0xf] %v4307_v8  ;;  %2510 = vst [vmem:[#allocation2 + $0x44] sm:$0xf] %v4338_v9  ;;  %v2059_v49 = vpack.c.bf16 %v2034_v7, %v2033_v5  ;;  %v5261_v58 = vld [vmem:[#allocation12 + $0x40] sm:$0xff]   ;;  %v5263_v61 = vld [vmem:[#allocation12 + $0x48] sm:$0xff]  }
 0x29f   : > { %2511 = vst [vmem:[#allocation2 + $0x4c] sm:$0xf] %v4339_v10  ;;  %v2221_v53 = vsub.bf16 %v2140_v35, %v2213_v38  ;;  %v2445_v43 = vadd.bf16 %v2437_v13, %v2365_v42  ;;  %v2212_v52 = vmul.bf16 %v5233_v31, %v2067_v48  ;;  %v2436_v14 = vmul.bf16 %v5234_v11, %v2067_v48  ;;  %v5262_v25 = vld [vmem:[#allocation12] sm:$0xff]   ;;  %v5264_v62 = vld [vmem:[#allocation12 + $0x8] sm:$0xff]   ;;  %v5265_v47 = vld [vmem:[#allocation12 + $0x50] sm:$0xff]  }
 0x2a0   : > { %v2139_v15 = vmul.bf16 %v5235_v39, %v2059_v49  ;;  %v2364_v34 = vmul.bf16 %v5236_v12, %v2059_v49  ;;  %v5266_v59 = vld [vmem:[#allocation12 + $0x10] sm:$0xff]   ;;  %v5267_v46 = vld [vmem:[#allocation12 + $0x58] sm:$0xff]   ;;  %v5269_v1 = vld [vmem:[#allocation12 + $0x60] sm:$0xff]  }
 0x2a1   : > { %v4312_v16 = vcombine.low %v2221_v53, %v2221_v53  ;;  %v4313_v17 = vcombine.high %v2221_v53, %v2221_v53  ;;  %v4344_v18 = vcombine.low %v2445_v43, %v2445_v43  ;;  %v4345_v19 = vcombine.high %v2445_v43, %v2445_v43  ;;  %v5243_v55 = vld [vmem:[#allocation2 + $0x50] ss:$8 sps:$4 sm:$0xff]   ;;  %v5270_v2 = vld [vmem:[#allocation12 + $0x20] sm:$0xff]   ;;  %v5271_v3 = vld [vmem:[#allocation12 + $0x68] sm:$0xff]  }
 0x2a2   : > { %v2220_v20 = vsub.bf16 %v2139_v15, %v2212_v52  ;;  %v2444_v21 = vadd.bf16 %v2436_v14, %v2364_v34  ;;  %v5245_v54 = vld [vmem:[#allocation2 + $0x54] ss:$8 sps:$4 sm:$0xff]   ;;  %v5272_v4 = vld [vmem:[#allocation12 + $0x28] sm:$0xff]   ;;  %v5284_v11 = vld [vmem:[#allocation12 + $0x60] sm:$0xff]  }
 0x2a3   : > { %2292 = vst [vmem:[#allocation2 + $0x70] sm:$0xf] %v4312_v16  ;;  %2293 = vst [vmem:[#allocation2 + $0x78] sm:$0xf] %v4313_v17  ;;  %v5268_v63 = vld [vmem:[#allocation12 + $0x18] sm:$0xff]   ;;  %v5273_v51 = vld [vmem:[#allocation12 + $0x70] sm:$0xff]  }
 0x2a4   : > { %2516 = vst [vmem:[#allocation2 + $0x74] sm:$0xf] %v4344_v18  ;;  %2517 = vst [vmem:[#allocation2 + $0x7c] sm:$0xf] %v4345_v19  ;;  %v4310_v22 = vcombine.low %v2220_v20, %v2220_v20  ;;  %v4311_v33 = vcombine.high %v2220_v20, %v2220_v20  ;;  %v4342_v23 = vcombine.low %v2444_v21, %v2444_v21  ;;  %v5274_v50 = vld [vmem:[#allocation12 + $0x30] sm:$0xff]   ;;  %v5275_v5 = vld [vmem:[#allocation12 + $0x78] sm:$0xff]  }
 0x2a5   : > { %v4343_v32 = vcombine.high %v2444_v21, %v2444_v21  ;;  %v5246_v41 = vld [vmem:[#allocation2 + $0x40] ss:$8 sps:$4 sm:$0xff]   ;;  %v5276_v6 = vld [vmem:[#allocation12 + $0x38] sm:$0xff]   ;;  %v5279_v30 = vld [vmem:[#allocation12 + $0x30] sm:$0xff]  }
 0x2a6   : > { %2290 = vst [vmem:[#allocation2 + $0x60] sm:$0xf] %v4310_v22  ;;  %2291 = vst [vmem:[#allocation2 + $0x68] sm:$0xf] %v4311_v33  ;;  %v5248_v29 = vld [vmem:[#allocation2 + $0x44] ss:$8 sps:$4 sm:$0xff]  }
 0x2a7   : > { %2514 = vst [vmem:[#allocation2 + $0x64] sm:$0xf] %v4342_v23  ;;  %2515 = vst [vmem:[#allocation2 + $0x6c] sm:$0xf] %v4343_v32  ;;  %v5277_v31 = vld [vmem:[#allocation12 + $0x38] sm:$0xff]   ;;  %v5280_v8 = vld [vmem:[#allocation12 + $0x70] sm:$0xff]  }
 0x2a8   : > { %v5278_v7 = vld [vmem:[#allocation12 + $0x78] sm:$0xff]   ;;  %v5281_v9 = vld [vmem:[#allocation12 + $0x28] sm:$0xff]   ;;  %v5287_v38 = vld [vmem:[#allocation12 + $0x10] sm:$0xff]  }
 0x2a9   : > { %v5282_v10 = vld [vmem:[#allocation12 + $0x68] sm:$0xff]   ;;  %v5285_v39 = vld [vmem:[#allocation12 + $0x18] sm:$0xff]   ;;  %v5288_v13 = vld [vmem:[#allocation12 + $0x50] sm:$0xff]  }
 0x2aa   : > { %v5237_v45 = vld [vmem:[#allocation2 + $0x70] ss:$8 sps:$4 sm:$0xff]   ;;  %v5289_v35 = vld [vmem:[#allocation12 + $0x8] sm:$0xff]   ;;  %v5291_v48 = vld [vmem:[#allocation12] sm:$0xff]  }
 0x2ab   : > { %v5239_v36 = vld [vmem:[#allocation2 + $0x74] ss:$8 sps:$4 sm:$0xff]   ;;  %v5290_v42 = vld [vmem:[#allocation12 + $0x48] sm:$0xff]   ;;  %v5292_v49 = vld [vmem:[#allocation12 + $0x40] sm:$0xff]  }
 0x2ac   : > { %2678 = vmatprep.subr.bf16.mxu0 %v5239_v36  ;;  %2855 = vmatprep.subr.bf16.mxu1 %v5239_v36  ;;  %v5286_v12 = vld [vmem:[#allocation12 + $0x58] sm:$0xff]  }
 0x2ad   : > { %2679 = vmatpush1.bf16.msra.mxu0 %v5237_v45  ;;  %2856 = vmatpush1.bf16.msra.mxu1 %v5237_v45  ;;  %v5240_v44 = vld [vmem:[#allocation2 + $0x60] ss:$8 sps:$4 sm:$0xff]  }
 0x2ae   : > { %v5242_v27 = vld [vmem:[#allocation2 + $0x64] ss:$8 sps:$4 sm:$0xff]  }
 0x2af   : > { %2680 = vmatprep.subr.bf16.mxu0 %v5242_v27  ;;  %2857 = vmatprep.subr.bf16.mxu1 %v5242_v27 }
 0x2b1   : > { %2681 = vmatpush1.bf16.msra.mxu0 %v5240_v44  ;;  %2858 = vmatpush1.bf16.msra.mxu1 %v5240_v44 }
 0x2b2   : > { %2682 = vmatprep.subr.bf16.mxu0 %v5245_v54  ;;  %2859 = vmatprep.subr.bf16.mxu1 %v5245_v54 }
 0x2b5   : > { %2683 = vmatpush1.bf16.msra.mxu0 %v5243_v55  ;;  %2860 = vmatpush1.bf16.msra.mxu1 %v5243_v55 }
 0x2b6   : > { %2684 = vmatprep.subr.bf16.mxu0 %v5248_v29  ;;  %2861 = vmatprep.subr.bf16.mxu1 %v5248_v29 }
 0x2b9   : > { %2685 = vmatpush1.bf16.msra.mxu0 %v5246_v41  ;;  %2862 = vmatpush1.bf16.msra.mxu1 %v5246_v41 }
 0x2ba   : > { %2686 = vmatprep.subr.bf16.mxu0 %v5251_v37  ;;  %2863 = vmatprep.subr.bf16.mxu1 %v5251_v37 }
 0x2bd   : > { %2687 = vmatpush1.bf16.msra.mxu0 %v5249_v40  ;;  %2864 = vmatpush1.bf16.msra.mxu1 %v5249_v40 }
 0x2be   : > { %2688 = vmatprep.subr.bf16.mxu0 %v5254_v26  ;;  %2865 = vmatprep.subr.bf16.mxu1 %v5254_v26 }
 0x2c1   : > { %2689 = vmatpush1.bf16.msra.mxu0 %v5252_v28  ;;  %2866 = vmatpush1.bf16.msra.mxu1 %v5252_v28 }
 0x2c2   : > { %2690 = vmatprep.subr.bf16.mxu0 %v5257_v24  ;;  %2867 = vmatprep.subr.bf16.mxu1 %v5257_v24 }
 0x2c5   : > { %2691 = vmatpush1.bf16.msra.mxu0 %v5255_v56  ;;  %2868 = vmatpush1.bf16.msra.mxu1 %v5255_v56 }
 0x2c6   : > { %2692 = vmatprep.subr.bf16.mxu0 %v5260_v57  ;;  %2869 = vmatprep.subr.bf16.mxu1 %v5260_v57 }
 0x2c9   : > { %2693 = vmatpush1.bf16.msra.mxu0 %v5258_v60  ;;  %2870 = vmatpush1.bf16.msra.mxu1 %v5258_v60 }
 0x2ca   : > { %4911 = vmatprep.subr.bf16.mxu0 %v5277_v31  ;;  %4959 = vmatprep.subr.bf16.mxu1 %v5278_v7 }
 0x2cc   : > { %2888 = vmatmul.mubr.bf16.vlgmr.msra.gmra.mxu1 %v5261_v58  ;;  %2711 = vmatmul.mubr.bf16.vlgmr.msra.gmra.mxu0 %v5262_v25 }
 0x2cd   : > { %2897 = vmatprep.mubr.bf16.mxu1 %v5524_v0  ;;  %2720 = vmatprep.mubr.bf16.mxu0 %v5524_v0 }
 0x2ce   : > { %4912 = vmatpush3.bf16.msra.mxu0 %v5277_v31  ;;  %4960 = vmatpush3.bf16.msra.mxu1 %v5278_v7 }
 0x2cf   : > { %4913 = vmatprep.subr.bf16.mxu0 %v5279_v30  ;;  %4961 = vmatprep.subr.bf16.mxu1 %v5280_v8 }
 0x2d2   : > { %4914 = vmatpush3.bf16.msra.mxu0 %v5279_v30  ;;  %4962 = vmatpush3.bf16.msra.mxu1 %v5280_v8 }
 0x2d3   : > { %4915 = vmatprep.subr.bf16.mxu0 %v5281_v9  ;;  %4963 = vmatprep.subr.bf16.mxu1 %v5282_v10 }
 0x2d4   : > { %2898 = vmatmul.mubr.bf16.gmra.mxu1 %v5263_v61  ;;  %2721 = vmatmul.mubr.bf16.gmra.mxu0 %v5264_v62 }
 0x2d5   : > { %2907 = vmatprep.mubr.bf16.mxu1 %v5524_v0  ;;  %2730 = vmatprep.mubr.bf16.mxu0 %v5524_v0 }
 0x2d6   : > { %4916 = vmatpush3.bf16.msra.mxu0 %v5281_v9  ;;  %4964 = vmatpush3.bf16.msra.mxu1 %v5282_v10 }
 0x2d7   : > { %4965 = vmatprep.subr.bf16.mxu1 %v5284_v11 }
 0x2da   : > { %4966 = vmatpush3.bf16.msra.mxu1 %v5284_v11 }
 0x2db   : > { %4967 = vmatprep.subr.bf16.mxu1 %v5286_v12 }
 0x2dc   : > { %2908 = vmatmul.mubr.bf16.gmra.mxu1 %v5265_v47  ;;  %2731 = vmatmul.mubr.bf16.gmra.mxu0 %v5266_v59 }
 0x2dd   : > { %2917 = vmatprep.mubr.bf16.mxu1 %v5524_v0  ;;  %2740 = vmatprep.mubr.bf16.mxu0 %v5524_v0 }
 0x2de   : > { %4968 = vmatpush3.bf16.msra.mxu1 %v5286_v12 }
 0x2df   : > { %4969 = vmatprep.subr.bf16.mxu1 %v5288_v13 }
 0x2e2   : > { %4970 = vmatpush3.bf16.msra.mxu1 %v5288_v13 }
 0x2e3   : > { %4971 = vmatprep.subr.bf16.mxu1 %v5290_v42 }
 0x2e4   : > { %2918 = vmatmul.mubr.bf16.gmra.mxu1 %v5267_v46  ;;  %2741 = vmatmul.mubr.bf16.gmra.mxu0 %v5268_v63 }
 0x2e5   : > { %2927 = vmatprep.mubr.bf16.mxu1 %v5524_v0  ;;  %2750 = vmatprep.mubr.bf16.mxu0 %v5524_v0 }
 0x2e6   : > { %4972 = vmatpush3.bf16.msra.mxu1 %v5290_v42 }
 0x2e7   : > { %4973 = vmatprep.subr.bf16.mxu1 %v5292_v49 }
 0x2ea   : > { %4974 = vmatpush3.bf16.msra.mxu1 %v5292_v49 }
 0x2ec   : > { %2928 = vmatmul.mubr.bf16.gmra.mxu1 %v5269_v1  ;;  %2751 = vmatmul.mubr.bf16.gmra.mxu0 %v5270_v2 }
 0x2ed   : > { %2937 = vmatprep.mubr.bf16.mxu1 %v5524_v0  ;;  %2760 = vmatprep.mubr.bf16.mxu0 %v5524_v0 }
 0x2f4   : > { %2938 = vmatmul.mubr.bf16.gmra.mxu1 %v5271_v3  ;;  %2761 = vmatmul.mubr.bf16.gmra.mxu0 %v5272_v4 }
 0x2f5   : > { %2947 = vmatprep.mubr.bf16.mxu1 %v5524_v0  ;;  %2770 = vmatprep.mubr.bf16.mxu0 %v5524_v0 }
 0x2fc   : > { %2948 = vmatmul.mubr.bf16.gmra.mxu1 %v5273_v51  ;;  %2771 = vmatmul.mubr.bf16.gmra.mxu0 %v5274_v50 }
 0x2fd   : > { %2957 = vmatprep.mubr.bf16.mxu1 %v5524_v0  ;;  %2780 = vmatprep.mubr.bf16.mxu0 %v5524_v0  ;;  %v5283_v0 = vld [vmem:[#allocation12 + $0x20] sm:$0xff]  }
 0x2fe   : > { %4917 = vmatprep.subr.bf16.mxu0 %v5283_v0 }
 0x2ff   : > { %4918 = vmatpush3.bf16.msra.mxu0 %v5283_v0 }
 0x300   : > { %4919 = vmatprep.subr.bf16.mxu0 %v5285_v39 }
 0x303   : > { %4920 = vmatpush3.bf16.msra.mxu0 %v5285_v39 }
 0x304   : > { %2958 = vmatmul.mubr.bf16.gmra.mxu1 %v5275_v5  ;;  %2781 = vmatmul.mubr.bf16.gmra.mxu0 %v5276_v6 }
 0x305   : > { %4921 = vmatprep.subr.bf16.mxu0 %v5287_v38 }
 0x307   : > { %4922 = vmatpush3.bf16.msra.mxu0 %v5287_v38 }
 0x308   : > { %4923 = vmatprep.subr.bf16.mxu0 %v5289_v35 }
 0x30b   : > { %4924 = vmatpush3.bf16.msra.mxu0 %v5289_v35 }
 0x30c   : > { %4925 = vmatprep.subr.bf16.mxu0 %v5291_v48 }
 0x30f   : > { %4926 = vmatpush3.bf16.msra.mxu0 %v5291_v48 }
 0x38c   : > { %v2889_v53 = vpop.f32.mrf.mxu1  ;;  %v2712_v43 = vpop.f32.mrf.mxu0 }
 0x38e   : > { %v2891_v52 = vpop.f32.mrf.mxu1  ;;  %v2714_v14 = vpop.f32.mrf.mxu0 }
 0x38f   : > { %v2968_v18 = vsub.f32 %v2712_v43, %v2891_v52  ;;  %v3064_v19 = vadd.f32 %v2889_v53, %v2714_v14 }
 0x390   : > { %v2893_v15 = vpop.f32.mrf.mxu1  ;;  %v2716_v34 = vpop.f32.mrf.mxu0 }
 0x392   : > { %v2895_v16 = vpop.f32.mrf.mxu1  ;;  %v2718_v17 = vpop.f32.mrf.mxu0 }
 0x393   : > { %v2969_v20 = vsub.f32 %v2716_v34, %v2895_v16  ;;  %v3065_v21 = vadd.f32 %v2893_v15, %v2718_v17 }
 0x394   : > { %v2899_v22 = vpop.f32.mrf.mxu1  ;;  %v2722_v33 = vpop.f32.mrf.mxu0 }
 0x395   : > { %v4612_v23 = vpack.c.bf16 %v2969_v20, %v2968_v18  ;;  %v4652_v32 = vpack.c.bf16 %v3065_v21, %v3064_v19 }
 0x396   : > { %v2901_v45 = vpop.f32.mrf.mxu1  ;;  %v2724_v36 = vpop.f32.mrf.mxu0 }
 0x397   : > { %4613 = vst [vmem:[#allocation3] sm:$0xff] %v4612_v23   ;;  %4711 = vst [vmem:[#allocation3 + $0x40] sm:$0xff] %v4652_v32   ;;  %v2970_v29 = vsub.f32 %v2722_v33, %v2901_v45  ;;  %v3066_v41 = vadd.f32 %v2899_v22, %v2724_v36 }
 0x398   : > { %v2903_v27 = vpop.f32.mrf.mxu1  ;;  %v2726_v44 = vpop.f32.mrf.mxu0 }
 0x39a   : > { %v2905_v54 = vpop.f32.mrf.mxu1  ;;  %v2728_v55 = vpop.f32.mrf.mxu0 }
 0x39b   : > { %v2971_v37 = vsub.f32 %v2726_v44, %v2905_v54  ;;  %v3067_v40 = vadd.f32 %v2903_v27, %v2728_v55 }
 0x39c   : > { %v2909_v26 = vpop.f32.mrf.mxu1  ;;  %v2732_v28 = vpop.f32.mrf.mxu0 }
 0x39d   : > { %v4617_v24 = vpack.c.bf16 %v2971_v37, %v2970_v29  ;;  %v4657_v56 = vpack.c.bf16 %v3067_v40, %v3066_v41 }
 0x39e   : > { %v2911_v57 = vpop.f32.mrf.mxu1  ;;  %v2734_v60 = vpop.f32.mrf.mxu0  ;;  %v5293_v58 = vld [vmem:[#allocation3] sm:$0xff]  }
 0x39f   : > { %4704 = vst [vmem:[#allocation3 + $0x8] sm:$0xff] %v4617_v24   ;;  %4712 = vst [vmem:[#allocation3 + $0x48] sm:$0xff] %v4657_v56   ;;  %4927 = vmatprep.mubr.bf16.mxu0 %v5293_v58  ;;  %4975 = vmatprep.mubr.bf16.mxu1 %v5293_v58  ;;  %v2972_v59 = vsub.f32 %v2732_v28, %v2911_v57  ;;  %v3068_v46 = vadd.f32 %v2909_v26, %v2734_v60 }
 0x3a0   : > { %v2913_v25 = vpop.f32.mrf.mxu1  ;;  %v2736_v61 = vpop.f32.mrf.mxu0 }
 0x3a2   : > { %v2915_v62 = vpop.f32.mrf.mxu1  ;;  %v2738_v47 = vpop.f32.mrf.mxu0 }
 0x3a3   : > { %v2973_v63 = vsub.f32 %v2736_v61, %v2915_v62  ;;  %v3069_v1 = vadd.f32 %v2913_v25, %v2738_v47 }
 0x3a4   : > { %v2919_v2 = vpop.f32.mrf.mxu1  ;;  %v2742_v3 = vpop.f32.mrf.mxu0 }
 0x3a5   : > { %v4622_v4 = vpack.c.bf16 %v2973_v63, %v2972_v59  ;;  %v4662_v51 = vpack.c.bf16 %v3069_v1, %v3068_v46 }
 0x3a6   : > { %v2921_v50 = vpop.f32.mrf.mxu1  ;;  %v2744_v5 = vpop.f32.mrf.mxu0  ;;  %v5294_v6 = vld [vmem:[#allocation3 + $0x8] sm:$0xff]  }
 0x3a7   : > { %4705 = vst [vmem:[#allocation3 + $0x10] sm:$0xff] %v4622_v4   ;;  %4713 = vst [vmem:[#allocation3 + $0x50] sm:$0xff] %v4662_v51   ;;  %4928 = vmatmul.mubr.bf16.vlgmr.msra.gmra.mxu0 %v5294_v6  ;;  %4976 = vmatmul.mubr.bf16.vlgmr.msra.gmra.mxu1 %v5294_v6  ;;  %v2974_v9 = vsub.f32 %v2742_v3, %v2921_v50  ;;  %v3070_v10 = vadd.f32 %v2919_v2, %v2744_v5 }
 0x3a8   : > { %v2923_v31 = vpop.f32.mrf.mxu1  ;;  %v2746_v7 = vpop.f32.mrf.mxu0 }
 0x3aa   : > { %v2925_v30 = vpop.f32.mrf.mxu1  ;;  %v2748_v8 = vpop.f32.mrf.mxu0 }
 0x3ab   : > { %v2975_v0 = vsub.f32 %v2746_v7, %v2925_v30  ;;  %v3071_v11 = vadd.f32 %v2923_v31, %v2748_v8 }
 0x3ac   : > { %v2929_v39 = vpop.f32.mrf.mxu1  ;;  %v2752_v12 = vpop.f32.mrf.mxu0 }
 0x3ad   : > { %v4627_v38 = vpack.c.bf16 %v2975_v0, %v2974_v9  ;;  %v4667_v13 = vpack.c.bf16 %v3071_v11, %v3070_v10 }
 0x3ae   : > { %v2931_v35 = vpop.f32.mrf.mxu1  ;;  %v2754_v42 = vpop.f32.mrf.mxu0  ;;  %v5295_v48 = vld [vmem:[#allocation3 + $0x10] sm:$0xff]  }
 0x3af   : > { %4706 = vst [vmem:[#allocation3 + $0x18] sm:$0xff] %v4627_v38   ;;  %4714 = vst [vmem:[#allocation3 + $0x58] sm:$0xff] %v4667_v13   ;;  %4931 = vmatprep.mubr.bf16.mxu0 %v5295_v48  ;;  %4979 = vmatprep.mubr.bf16.mxu1 %v5295_v48  ;;  %v2976_v14 = vsub.f32 %v2752_v12, %v2931_v35  ;;  %v3072_v15 = vadd.f32 %v2929_v39, %v2754_v42  ;;  %v5301_v39 = vld [vmem:[#allocation3 + $0x40] sm:$0xff]   ;;  %v5302_v12 = vld [vmem:[#allocation3 + $0x48] sm:$0xff]  }
 0x3b0   : > { %v2933_v49 = vpop.f32.mrf.mxu1  ;;  %v2756_v53 = vpop.f32.mrf.mxu0  ;;  %v5303_v38 = vld [vmem:[#allocation3 + $0x50] sm:$0xff]  }
 0x3b2   : > { %v2935_v43 = vpop.f32.mrf.mxu1  ;;  %v2758_v52 = vpop.f32.mrf.mxu0 }
 0x3b3   : > { %v2977_v34 = vsub.f32 %v2756_v53, %v2935_v43  ;;  %v3073_v16 = vadd.f32 %v2933_v49, %v2758_v52 }
 0x3b4   : > { %v2939_v17 = vpop.f32.mrf.mxu1  ;;  %v2762_v18 = vpop.f32.mrf.mxu0 }
 0x3b5   : > { %v4632_v19 = vpack.c.bf16 %v2977_v34, %v2976_v14  ;;  %v4672_v20 = vpack.c.bf16 %v3073_v16, %v3072_v15 }
 0x3b6   : > { %v2941_v21 = vpop.f32.mrf.mxu1  ;;  %v2764_v22 = vpop.f32.mrf.mxu0  ;;  %v5296_v33 = vld [vmem:[#allocation3 + $0x18] sm:$0xff]  }
 0x3b7   : > { %4707 = vst [vmem:[#allocation3 + $0x20] sm:$0xff] %v4632_v19   ;;  %4715 = vst [vmem:[#allocation3 + $0x60] sm:$0xff] %v4672_v20   ;;  %4932 = vmatmul.mubr.bf16.gmra.mxu0 %v5296_v33  ;;  %4980 = vmatmul.mubr.bf16.gmra.mxu1 %v5296_v33  ;;  %v2978_v27 = vsub.f32 %v2762_v18, %v2941_v21  ;;  %v3074_v44 = vadd.f32 %v2939_v17, %v2764_v22  ;;  %v5304_v13 = vld [vmem:[#allocation3 + $0x58] sm:$0xff]  }
 0x3b8   : > { %v2943_v23 = vpop.f32.mrf.mxu1  ;;  %v2766_v32 = vpop.f32.mrf.mxu0 }
 0x3ba   : > { %v2945_v45 = vpop.f32.mrf.mxu1  ;;  %v2768_v36 = vpop.f32.mrf.mxu0 }
 0x3bb   : > { %v2979_v54 = vsub.f32 %v2766_v32, %v2945_v45  ;;  %v3075_v55 = vadd.f32 %v2943_v23, %v2768_v36 }
 0x3bc   : > { %v2949_v29 = vpop.f32.mrf.mxu1  ;;  %v2772_v41 = vpop.f32.mrf.mxu0 }
 0x3bd   : > { %v4637_v37 = vpack.c.bf16 %v2979_v54, %v2978_v27  ;;  %v4677_v40 = vpack.c.bf16 %v3075_v55, %v3074_v44 }
 0x3be   : > { %v2951_v26 = vpop.f32.mrf.mxu1  ;;  %v2774_v28 = vpop.f32.mrf.mxu0  ;;  %v5297_v24 = vld [vmem:[#allocation3 + $0x20] sm:$0xff]  }
 0x3bf   : > { %4708 = vst [vmem:[#allocation3 + $0x28] sm:$0xff] %v4637_v37   ;;  %4716 = vst [vmem:[#allocation3 + $0x68] sm:$0xff] %v4677_v40   ;;  %4935 = vmatprep.mubr.bf16.mxu0 %v5297_v24  ;;  %4983 = vmatprep.mubr.bf16.mxu1 %v5297_v24  ;;  %v2980_v25 = vsub.f32 %v2772_v41, %v2951_v26  ;;  %v3076_v61 = vadd.f32 %v2949_v29, %v2774_v28  ;;  %v5305_v35 = vld [vmem:[#allocation3 + $0x60] sm:$0xff]  }
 0x3c0   : > { %v2953_v56 = vpop.f32.mrf.mxu1  ;;  %v2776_v57 = vpop.f32.mrf.mxu0 }
 0x3c2   : > { %v2955_v60 = vpop.f32.mrf.mxu1  ;;  %v2778_v58 = vpop.f32.mrf.mxu0 }
 0x3c3   : > { %v2981_v62 = vsub.f32 %v2776_v57, %v2955_v60  ;;  %v3077_v47 = vadd.f32 %v2953_v56, %v2778_v58 }
 0x3c4   : > { %v2959_v59 = vpop.f32.mrf.mxu1  ;;  %v2782_v46 = vpop.f32.mrf.mxu0 }
 0x3c5   : > { %v4642_v63 = vpack.c.bf16 %v2981_v62, %v2980_v25  ;;  %v4682_v1 = vpack.c.bf16 %v3077_v47, %v3076_v61  ;;  %v3805_v25 = vld [vmem:[#allocation10 + $0x90] sm:$0xff] }
 0x3c6   : > { %v2961_v2 = vpop.f32.mrf.mxu1  ;;  %v2784_v3 = vpop.f32.mrf.mxu0  ;;  %v5298_v4 = vld [vmem:[#allocation3 + $0x28] sm:$0xff]   ;;  %v3901_v61 = vld [vmem:[#allocation10 + $0x10] sm:$0xff] }
 0x3c7   : > { %4709 = vst [vmem:[#allocation3 + $0x30] sm:$0xff] %v4642_v63   ;;  %4717 = vst [vmem:[#allocation3 + $0x70] sm:$0xff] %v4682_v1   ;;  %4936 = vmatmul.mubr.bf16.gmra.mxu0 %v5298_v4  ;;  %4984 = vmatmul.mubr.bf16.gmra.mxu1 %v5298_v4  ;;  %v2982_v31 = vsub.f32 %v2782_v46, %v2961_v2  ;;  %v3078_v7 = vadd.f32 %v2959_v59, %v2784_v3  ;;  %v5306_v42 = vld [vmem:[#allocation3 + $0x68] sm:$0xff]  }
 0x3c8   : > { %v2963_v51 = vpop.f32.mrf.mxu1  ;;  %v2786_v50 = vpop.f32.mrf.mxu0 }
 0x3ca   : > { %v2965_v5 = vpop.f32.mrf.mxu1  ;;  %v2788_v6 = vpop.f32.mrf.mxu0 }
 0x3cb   : > { %v2983_v30 = vsub.f32 %v2786_v50, %v2965_v5  ;;  %v3079_v8 = vadd.f32 %v2963_v51, %v2788_v6  ;;  %v3803_v51 = vld [vmem:[#allocation10 + $0x80] sm:$0xff] }
 0x3cc   : > { %v3899_v50 = vld [vmem:[#allocation10] sm:$0xff] }
 0x3cd   : > { %v4647_v9 = vpack.c.bf16 %v2983_v30, %v2982_v31  ;;  %v4687_v10 = vpack.c.bf16 %v3079_v8, %v3078_v7  ;;  %v3806_v7 = vld [vmem:[#allocation10 + $0x98] sm:$0xff] }
 0x3ce   : > { %v5299_v0 = vld [vmem:[#allocation3 + $0x30] sm:$0xff]   ;;  %v3902_v30 = vld [vmem:[#allocation10 + $0x18] sm:$0xff] }
 0x3cf   : > { %4710 = vst [vmem:[#allocation3 + $0x38] sm:$0xff] %v4647_v9   ;;  %4718 = vst [vmem:[#allocation3 + $0x78] sm:$0xff] %v4687_v10   ;;  %4939 = vmatprep.mubr.bf16.mxu0 %v5299_v0  ;;  %4987 = vmatprep.mubr.bf16.mxu1 %v5299_v0  ;;  %v5307_v48 = vld [vmem:[#allocation3 + $0x70] sm:$0xff]  }
 0x3d6   : > { %v5300_v11 = vld [vmem:[#allocation3 + $0x38] sm:$0xff]  }
 0x3d7   : > { %4940 = vmatmul.mubr.bf16.gmra.mxu0 %v5300_v11  ;;  %4988 = vmatmul.mubr.bf16.gmra.mxu1 %v5300_v11  ;;  %v5308_v49 = vld [vmem:[#allocation3 + $0x78] sm:$0xff]  }
 0x3d8   : > { %4943 = vmatprep.mubr.bf16.mxu0 %v5301_v39  ;;  %4991 = vmatprep.mubr.bf16.mxu1 %v5301_v39 }
 0x3df   : > { %4944 = vmatmul.mubr.bf16.gmra.mxu0 %v5302_v12  ;;  %4992 = vmatmul.mubr.bf16.gmra.mxu1 %v5302_v12 }
 0x3e0   : > { %4947 = vmatprep.mubr.bf16.mxu0 %v5303_v38  ;;  %4995 = vmatprep.mubr.bf16.mxu1 %v5303_v38 }
 0x3e7   : > { %4948 = vmatmul.mubr.bf16.gmra.mxu0 %v5304_v13  ;;  %4996 = vmatmul.mubr.bf16.gmra.mxu1 %v5304_v13 }
 0x3e8   : > { %4951 = vmatprep.mubr.bf16.mxu0 %v5305_v35  ;;  %4999 = vmatprep.mubr.bf16.mxu1 %v5305_v35 }
 0x3ef   : > { %4952 = vmatmul.mubr.bf16.gmra.mxu0 %v5306_v42  ;;  %5000 = vmatmul.mubr.bf16.gmra.mxu1 %v5306_v42 }
 0x3f0   : > { %4955 = vmatprep.mubr.bf16.mxu0 %v5307_v48  ;;  %5003 = vmatprep.mubr.bf16.mxu1 %v5307_v48 }
 0x3f7   : > { %4956 = vmatmul.mubr.bf16.gmra.mxu0 %v5308_v49  ;;  %5004 = vmatmul.mubr.bf16.gmra.mxu1 %v5308_v49 }
 0x467   : > { %v4929_v53 = vpop.f32.mrf.mxu0  ;;  %v4977_v43 = vpop.f32.mrf.mxu1 }
 0x469   : > { %v3386_v52 = vpop.f32.mrf.mxu0  ;;  %v3611_v14 = vpop.f32.mrf.mxu1 }
 0x46b   : > { %v4930_v15 = vpop.f32.mrf.mxu0  ;;  %v4978_v34 = vpop.f32.mrf.mxu1 }
 0x46d   : > { %v5872_v16 = vpop.f32.mrf.mxu0  ;;  %v5874_v17 = vpop.f32.mrf.mxu1 }
 0x477   : > { %v5876_v18 = vpop.f32.mrf.mxu0  ;;  %v5878_v19 = vpop.f32.mrf.mxu1 }
 0x479   : > { %v5880_v20 = vpop.f32.mrf.mxu0  ;;  %v5882_v21 = vpop.f32.mrf.mxu1 }
 0x47b   : > { %v5884_v22 = vpop.f32.mrf.mxu0  ;;  %v5886_v33 = vpop.f32.mrf.mxu1 }
 0x47d   : > { %v5888_v23 = vpop.f32.mrf.mxu0  ;;  %v5890_v32 = vpop.f32.mrf.mxu1 }
 0x487   : > { %v5892_v45 = vpop.f32.mrf.mxu0  ;;  %v5894_v36 = vpop.f32.mrf.mxu1 }
 0x489   : > { %v5896_v27 = vpop.f32.mrf.mxu0  ;;  %v5898_v44 = vpop.f32.mrf.mxu1 }
 0x48b   : > { %v5900_v54 = vpop.f32.mrf.mxu0  ;;  %v5902_v55 = vpop.f32.mrf.mxu1 }
 0x48d   : > { %v5904_v29 = vpop.f32.mrf.mxu0  ;;  %v5906_v41 = vpop.f32.mrf.mxu1 }
 0x497   : > { %v5908_v37 = vpop.f32.mrf.mxu0  ;;  %v5910_v40 = vpop.f32.mrf.mxu1 }
 0x499   : > { %v5912_v26 = vpop.f32.mrf.mxu0  ;;  %v5914_v28 = vpop.f32.mrf.mxu1 }
 0x49b   : > { %v5916_v24 = vpop.f32.mrf.mxu0  ;;  %v5918_v56 = vpop.f32.mrf.mxu1 }
 0x49d   : > { %v5920_v57 = vpop.f32.mrf.mxu0  ;;  %v5922_v60 = vpop.f32.mrf.mxu1 }
 0x49f   : > { %v4945_v58 = vpop.f32.mrf.mxu0  ;;  %v4993_v62 = vpop.f32.mrf.mxu1 }
 0x4a0   : > { %v3756_v47 = vadd.f32 %v4977_v43, %v4945_v58  ;;  %v3740_v59 = vsub.f32 %v4929_v53, %v4993_v62  ;;  %v3809_v62 = vld [vmem:[#allocation10 + $0xb0] sm:$0xff] }
 0x4a1   : > { %v3450_v46 = vpop.f32.mrf.mxu0  ;;  %v3675_v63 = vpop.f32.mrf.mxu1 }
 0x4a2   : > { %v3821_v1 = vmul.f32 %v3805_v25, %v3756_v47  ;;  %v3917_v2 = vmul.f32 %v3901_v61, %v3756_v47  ;;  %v3788_v3 = vmul.f32 %v3901_v61, %v3740_v59  ;;  %v3885_v4 = vmul.f32 %v3805_v25, %v3740_v59  ;;  %v3905_v47 = vld [vmem:[#allocation10 + $0x30] sm:$0xff] }
 0x4a3   : > { %v3754_v5 = vadd.f32 %v3611_v14, %v3450_v46  ;;  %v3738_v6 = vsub.f32 %v3386_v52, %v3675_v63  ;;  %v4946_v31 = vpop.f32.mrf.mxu0  ;;  %v4994_v8 = vpop.f32.mrf.mxu1  ;;  %v3804_v52 = vld [vmem:[#allocation10 + $0x88] sm:$0xff] }
 0x4a4   : > { %v3837_v9 = vsub.f32 %v3788_v3, %v3821_v1  ;;  %v3933_v10 = vadd.f32 %v3917_v2, %v3885_v4  ;;  %v3757_v0 = vadd.f32 %v4978_v34, %v4946_v31  ;;  %v3741_v11 = vsub.f32 %v4930_v15, %v4994_v8  ;;  %v3900_v14 = vld [vmem:[#allocation10 + $0x8] sm:$0xff] }
 0x4a5   : > { %v3819_v39 = vmul.f32 %v3803_v51, %v3754_v5  ;;  %v3915_v12 = vmul.f32 %v3899_v50, %v3754_v5  ;;  %v3786_v38 = vmul.f32 %v3899_v50, %v3738_v6  ;;  %v3883_v13 = vmul.f32 %v3803_v51, %v3738_v6  ;;  %v3453_v35 = vpop.f32.mrf.mxu0  ;;  %v3678_v42 = vpop.f32.mrf.mxu1 }
 0x4a6   : > { %3853 = vst [vmem:[%s5926_s24 + $0x10] sm:$0xff] %v3837_v9  ;;  %4444 = vst [vmem:[%s5926_s24 + $0x90] sm:$0xff] %v3933_v10  ;;  %v3822_v48 = vmul.f32 %v3806_v7, %v3757_v0  ;;  %v3918_v49 = vmul.f32 %v3902_v30, %v3757_v0  ;;  %v3789_v53 = vmul.f32 %v3902_v30, %v3741_v11  ;;  %v3807_v30 = vld [vmem:[#allocation10 + $0xa0] sm:$0xff] }
 0x4a7   : > { %v3886_v43 = vmul.f32 %v3806_v7, %v3741_v11  ;;  %v3835_v15 = vsub.f32 %v3786_v38, %v3819_v39  ;;  %v3931_v34 = vadd.f32 %v3915_v12, %v3883_v13  ;;  %v3755_v58 = vadd.f32 %v5874_v17, %v3453_v35  ;;  %v4949_v61 = vpop.f32.mrf.mxu0  ;;  %v4997_v59 = vpop.f32.mrf.mxu1  ;;  %v3810_v11 = vld [vmem:[#allocation10 + $0xb8] sm:$0xff] }
 0x4a8   : > { %v3739_v25 = vsub.f32 %v5872_v16, %v3678_v42  ;;  %v3838_v46 = vsub.f32 %v3789_v53, %v3822_v48  ;;  %v3760_v1 = vadd.f32 %v5878_v19, %v4949_v61  ;;  %v3744_v2 = vsub.f32 %v5876_v18, %v4997_v59  ;;  %v3903_v19 = vld [vmem:[#allocation10 + $0x20] sm:$0xff]  ;;  %v3906_v39 = vld [vmem:[#allocation10 + $0x38] sm:$0xff]  ;;  %v3813_v59 = vld [vmem:[#allocation10 + $0xd0] sm:$0xff] }
 0x4a9   : > { %v3934_v63 = vadd.f32 %v3918_v49, %v3886_v43  ;;  %3851 = vst [vmem:[%s5926_s24] sm:$0xff] %v3835_v15  ;;  %4442 = vst [vmem:[%s5926_s24 + $0x80] sm:$0xff] %v3931_v34  ;;  %v3820_v3 = vmul.f32 %v3804_v52, %v3755_v58  ;;  %v3916_v4 = vmul.f32 %v3900_v14, %v3755_v58  ;;  %v3466_v50 = vpop.f32.mrf.mxu0  ;;  %v3691_v16 = vpop.f32.mrf.mxu1  ;;  %v3808_v58 = vld [vmem:[#allocation10 + $0xa8] sm:$0xff] }
 0x4aa   : > { %v3787_v51 = vmul.f32 %v3900_v14, %v3739_v25  ;;  %v3884_v17 = vmul.f32 %v3804_v52, %v3739_v25  ;;  %3854 = vst [vmem:[%s5926_s24 + $0x18] sm:$0xff] %v3838_v46  ;;  %v3825_v5 = vmul.f32 %v3809_v62, %v3760_v1  ;;  %v3921_v6 = vmul.f32 %v3905_v47, %v3760_v1  ;;  %v3909_v46 = vld [vmem:[#allocation10 + $0x50] sm:$0xff] }
 0x4ab   : > { %4445 = vst [vmem:[%s5926_s24 + $0x98] sm:$0xff] %v3934_v63  ;;  %v3792_v31 = vmul.f32 %v3905_v47, %v3744_v2  ;;  %v3889_v7 = vmul.f32 %v3809_v62, %v3744_v2  ;;  %v3758_v9 = vadd.f32 %v5882_v21, %v3466_v50  ;;  %v3742_v10 = vsub.f32 %v5880_v20, %v3691_v16  ;;  %v4950_v0 = vpop.f32.mrf.mxu0  ;;  %v4998_v12 = vpop.f32.mrf.mxu1 }
 0x4ac   : > { %v3836_v8 = vsub.f32 %v3787_v51, %v3820_v3  ;;  %v3932_v18 = vadd.f32 %v3916_v4, %v3884_v17  ;;  %v3761_v35 = vadd.f32 %v5886_v33, %v4950_v0  ;;  %v3745_v42 = vsub.f32 %v5884_v22, %v4998_v12  ;;  %v3904_v33 = vld [vmem:[#allocation10 + $0x28] sm:$0xff]  ;;  %v3910_v0 = vld [vmem:[#allocation10 + $0x58] sm:$0xff] }
 0x4ad   : > { %v3841_v38 = vsub.f32 %v3792_v31, %v3825_v5  ;;  %v3937_v13 = vadd.f32 %v3921_v6, %v3889_v7  ;;  %v3823_v48 = vmul.f32 %v3807_v30, %v3758_v9  ;;  %v3919_v49 = vmul.f32 %v3903_v19, %v3758_v9  ;;  %v3469_v43 = vpop.f32.mrf.mxu0  ;;  %v3694_v20 = vpop.f32.mrf.mxu1 }
 0x4ae   : > { %3852 = vst [vmem:[%s5926_s24 + $0x8] sm:$0xff] %v3836_v8  ;;  %4443 = vst [vmem:[%s5926_s24 + $0x88] sm:$0xff] %v3932_v18  ;;  %v3790_v53 = vmul.f32 %v3903_v19, %v3742_v10  ;;  %v3887_v21 = vmul.f32 %v3807_v30, %v3742_v10  ;;  %v3826_v52 = vmul.f32 %v3810_v11, %v3761_v35  ;;  %v3811_v30 = vld [vmem:[#allocation10 + $0xc0] sm:$0xff]  ;;  %v3814_v10 = vld [vmem:[#allocation10 + $0xd8] sm:$0xff] }
 0x4af   : > { %3857 = vst [vmem:[%s5926_s24 + $0x30] sm:$0xff] %v3841_v38  ;;  %4448 = vst [vmem:[%s5926_s24 + $0xb0] sm:$0xff] %v3937_v13  ;;  %v3922_v14 = vmul.f32 %v3906_v39, %v3761_v35  ;;  %v3793_v15 = vmul.f32 %v3906_v39, %v3745_v42  ;;  %v3890_v34 = vmul.f32 %v3810_v11, %v3745_v42  ;;  %v4953_v47 = vpop.f32.mrf.mxu0  ;;  %v5001_v63 = vpop.f32.mrf.mxu1 }
 0x4b0   : > { %v3839_v25 = vsub.f32 %v3790_v53, %v3823_v48  ;;  %v3935_v22 = vadd.f32 %v3919_v49, %v3887_v21  ;;  %v3759_v61 = vadd.f32 %v5890_v32, %v3469_v43  ;;  %v3743_v62 = vsub.f32 %v5888_v23, %v3694_v20 }
 0x4b1   : > { %v3842_v1 = vsub.f32 %v3793_v15, %v3826_v52  ;;  %v3938_v2 = vadd.f32 %v3922_v14, %v3890_v34  ;;  %v3764_v3 = vadd.f32 %v5894_v36, %v4953_v47  ;;  %v3748_v4 = vsub.f32 %v5892_v45, %v5001_v63  ;;  %v3482_v16 = vpop.f32.mrf.mxu0  ;;  %v3707_v23 = vpop.f32.mrf.mxu1  ;;  %v3907_v36 = vld [vmem:[#allocation10 + $0x40] sm:$0xff]  ;;  %v3812_v52 = vld [vmem:[#allocation10 + $0xc8] sm:$0xff] }
 0x4b2   : > { %3855 = vst [vmem:[%s5926_s24 + $0x20] sm:$0xff] %v3839_v25  ;;  %4446 = vst [vmem:[%s5926_s24 + $0xa0] sm:$0xff] %v3935_v22  ;;  %v3824_v51 = vmul.f32 %v3808_v58, %v3759_v61  ;;  %v3920_v17 = vmul.f32 %v3904_v33, %v3759_v61  ;;  %v3791_v50 = vmul.f32 %v3904_v33, %v3743_v62  ;;  %v3817_v33 = vld [vmem:[#allocation10 + $0xf0] sm:$0xff] }
 0x4b3   : > { %v3888_v32 = vmul.f32 %v3808_v58, %v3743_v62  ;;  %3858 = vst [vmem:[%s5926_s24 + $0x38] sm:$0xff] %v3842_v1  ;;  %4449 = vst [vmem:[%s5926_s24 + $0xb8] sm:$0xff] %v3938_v2  ;;  %v3829_v5 = vmul.f32 %v3813_v59, %v3764_v3  ;;  %v3925_v6 = vmul.f32 %v3909_v46, %v3764_v3  ;;  %v4954_v9 = vpop.f32.mrf.mxu0  ;;  %v5002_v11 = vpop.f32.mrf.mxu1  ;;  %v3913_v25 = vld [vmem:[#allocation10 + $0x70] sm:$0xff] }
 0x4b4   : > { %v3796_v31 = vmul.f32 %v3909_v46, %v3748_v4  ;;  %v3893_v7 = vmul.f32 %v3813_v59, %v3748_v4  ;;  %v3840_v19 = vsub.f32 %v3791_v50, %v3824_v51  ;;  %v3762_v8 = vadd.f32 %v5898_v44, %v3482_v16  ;;  %v3815_v50 = vld [vmem:[#allocation10 + $0xe0] sm:$0xff] }
 0x4b5   : > { %v3936_v45 = vadd.f32 %v3920_v17, %v3888_v32  ;;  %v3746_v18 = vsub.f32 %v5896_v27, %v3707_v23  ;;  %v3765_v38 = vadd.f32 %v5902_v55, %v4954_v9  ;;  %v3749_v13 = vsub.f32 %v5900_v54, %v5002_v11  ;;  %v3485_v49 = vpop.f32.mrf.mxu0  ;;  %v3710_v27 = vpop.f32.mrf.mxu1  ;;  %v3908_v55 = vld [vmem:[#allocation10 + $0x48] sm:$0xff] }
 0x4b6   : > { %v3845_v39 = vsub.f32 %v3796_v31, %v3829_v5  ;;  %v3941_v12 = vadd.f32 %v3925_v6, %v3893_v7  ;;  %3856 = vst [vmem:[%s5926_s24 + $0x28] sm:$0xff] %v3840_v19  ;;  %v3827_v35 = vmul.f32 %v3811_v30, %v3762_v8  ;;  %v3923_v42 = vmul.f32 %v3907_v36, %v3762_v8  ;;  %v3818_v6 = vld [vmem:[#allocation10 + $0xf8] sm:$0xff] }
 0x4b7   : > { %4447 = vst [vmem:[%s5926_s24 + $0xa8] sm:$0xff] %v3936_v45  ;;  %v3794_v48 = vmul.f32 %v3907_v36, %v3746_v18  ;;  %v3891_v44 = vmul.f32 %v3811_v30, %v3746_v18  ;;  %v3830_v53 = vmul.f32 %v3814_v10, %v3765_v38  ;;  %v3926_v21 = vmul.f32 %v3910_v0, %v3765_v38  ;;  %v4957_v58 = vpop.f32.mrf.mxu0  ;;  %v5005_v22 = vpop.f32.mrf.mxu1  ;;  %v3914_v31 = vld [vmem:[#allocation10 + $0x78] sm:$0xff] }
 0x4b8   : > { %3861 = vst [vmem:[%s5926_s24 + $0x50] sm:$0xff] %v3845_v39  ;;  %4452 = vst [vmem:[%s5926_s24 + $0xd0] sm:$0xff] %v3941_v12  ;;  %v3797_v43 = vmul.f32 %v3910_v0, %v3749_v13  ;;  %v3894_v20 = vmul.f32 %v3814_v10, %v3749_v13  ;;  %v3763_v15 = vadd.f32 %v5906_v41, %v3485_v49  ;;  %v3816_v12 = vld [vmem:[#allocation10 + $0xe8] sm:$0xff] }
 0x4b9   : > { %v3843_v14 = vsub.f32 %v3794_v48, %v3827_v35  ;;  %v3939_v54 = vadd.f32 %v3923_v42, %v3891_v44  ;;  %v3747_v34 = vsub.f32 %v5904_v29, %v3710_v27  ;;  %v3768_v47 = vadd.f32 %v5910_v40, %v4957_v58  ;;  %v3498_v2 = vpop.f32.mrf.mxu0  ;;  %v3723_v29 = vpop.f32.mrf.mxu1  ;;  %v3911_v40 = vld [vmem:[#allocation10 + $0x60] sm:$0xff] }
 0x4ba   : > { %v3846_v61 = vsub.f32 %v3797_v43, %v3830_v53  ;;  %v3942_v62 = vadd.f32 %v3926_v21, %v3894_v20  ;;  %v3752_v59 = vsub.f32 %v5908_v37, %v5005_v22  ;;  %v3828_v46 = vmul.f32 %v3812_v52, %v3763_v15 }
 0x4bb   : > { %3859 = vst [vmem:[%s5926_s24 + $0x40] sm:$0xff] %v3843_v14  ;;  %4450 = vst [vmem:[%s5926_s24 + $0xc0] sm:$0xff] %v3939_v54  ;;  %v3924_v63 = vmul.f32 %v3908_v55, %v3763_v15  ;;  %v3795_v1 = vmul.f32 %v3908_v55, %v3747_v34  ;;  %v3892_v41 = vmul.f32 %v3812_v52, %v3747_v34  ;;  %v4958_v5 = vpop.f32.mrf.mxu0  ;;  %v5006_v7 = vpop.f32.mrf.mxu1 }
 0x4bc   : > { %3862 = vst [vmem:[%s5926_s24 + $0x58] sm:$0xff] %v3846_v61  ;;  %4453 = vst [vmem:[%s5926_s24 + $0xd8] sm:$0xff] %v3942_v62  ;;  %v3833_v3 = vmul.f32 %v3817_v33, %v3768_v47  ;;  %v3929_v4 = vmul.f32 %v3913_v25, %v3768_v47  ;;  %v3800_v51 = vmul.f32 %v3913_v25, %v3752_v59 }
 0x4bd   : > { %v3897_v17 = vmul.f32 %v3817_v33, %v3752_v59  ;;  %v3844_v32 = vsub.f32 %v3795_v1, %v3828_v46  ;;  %v3940_v37 = vadd.f32 %v3924_v63, %v3892_v41  ;;  %v3766_v16 = vadd.f32 %v5914_v28, %v3498_v2  ;;  %v3726_v10 = vpop.f32.mrf.mxu1 }
 0x4be   : > { %v3750_v23 = vsub.f32 %v5912_v26, %v3723_v29  ;;  %v3849_v30 = vsub.f32 %v3800_v51, %v3833_v3  ;;  %v3769_v19 = vadd.f32 %v5918_v56, %v4958_v5  ;;  %v3753_v45 = vsub.f32 %v5916_v24, %v5006_v7  ;;  %v3501_v26 = vpop.f32.mrf.mxu0  ;;  %v3912_v24 = vld [vmem:[#allocation10 + $0x68] sm:$0xff] }
 0x4bf   : > { %v3945_v36 = vadd.f32 %v3929_v4, %v3897_v17  ;;  %3860 = vst [vmem:[%s5926_s24 + $0x48] sm:$0xff] %v3844_v32  ;;  %4451 = vst [vmem:[%s5926_s24 + $0xc8] sm:$0xff] %v3940_v37  ;;  %v3831_v8 = vmul.f32 %v3815_v50, %v3766_v16  ;;  %v3927_v18 = vmul.f32 %v3911_v40, %v3766_v16 }
 0x4c0   : > { %v3798_v9 = vmul.f32 %v3911_v40, %v3750_v23  ;;  %v3895_v28 = vmul.f32 %v3815_v50, %v3750_v23  ;;  %3865 = vst [vmem:[%s5926_s24 + $0x70] sm:$0xff] %v3849_v30  ;;  %v3834_v0 = vmul.f32 %v3818_v6, %v3769_v19  ;;  %v3930_v11 = vmul.f32 %v3914_v31, %v3769_v19 }
 0x4c1   : > { %4456 = vst [vmem:[%s5926_s24 + $0xf0] sm:$0xff] %v3945_v36  ;;  %v3801_v39 = vmul.f32 %v3914_v31, %v3753_v45  ;;  %v3898_v56 = vmul.f32 %v3818_v6, %v3753_v45  ;;  %v3767_v35 = vadd.f32 %v5922_v60, %v3501_v26  ;;  %v3751_v42 = vsub.f32 %v5920_v57, %v3726_v10 }
 0x4c2   : > { %v3847_v38 = vsub.f32 %v3798_v9, %v3831_v8  ;;  %v3943_v13 = vadd.f32 %v3927_v18, %v3895_v28 }
 0x4c3   : > { %v3850_v48 = vsub.f32 %v3801_v39, %v3834_v0  ;;  %v3946_v44 = vadd.f32 %v3930_v11, %v3898_v56  ;;  %v3832_v49 = vmul.f32 %v3816_v12, %v3767_v35  ;;  %v3928_v27 = vmul.f32 %v3912_v24, %v3767_v35 }
 0x4c4   : > { %3863 = vst [vmem:[%s5926_s24 + $0x60] sm:$0xff] %v3847_v38  ;;  %4454 = vst [vmem:[%s5926_s24 + $0xe0] sm:$0xff] %v3943_v13  ;;  %v3799_v53 = vmul.f32 %v3912_v24, %v3751_v42  ;;  %v3896_v21 = vmul.f32 %v3816_v12, %v3751_v42 }
 0x4c5   : > { %3866 = vst [vmem:[%s5926_s24 + $0x78] sm:$0xff] %v3850_v48  ;;  %4457 = vst [vmem:[%s5926_s24 + $0xf8] sm:$0xff] %v3946_v44 }
 0x4c6   : > { %v3848_v57 = vsub.f32 %v3799_v53, %v3832_v49  ;;  %v3944_v60 = vadd.f32 %v3928_v27, %v3896_v21 }
 0x4c8   : > { %3864 = vst [vmem:[%s5926_s24 + $0x68] sm:$0xff] %v3848_v57  ;;  %4455 = vst [vmem:[%s5926_s24 + $0xe8] sm:$0xff] %v3944_v60 }
 0x4c9   : > { %5454 = shalt.err (!%p5451_p3)
}
 0x4ca   : > { %s5455_s16 = scalar_lea.hbm %s5989_s12, 4096  ;;  %s5459_s30 = scalar_lea.hbm %s6041_s5, 8192 }
 0x4cb   : > { %p5456_p6 = scmp.ne.s32.totalorder %s5989_s12, %s5455_s16  ;;  %p5460_p13 = scmp.lt.s32.totalorder %s5989_s12, %s6041_s5 }
 0x4cc   : > { %p5461_p11 = scmp.lt.s32.totalorder %s5459_s30, %s5455_s16 }
 0x4cd   : > { %p5457_p4 = pnand %p5456_p6, %p6061_p2 }
 0x4ce   : > { %p5462_p5 = por %p5461_p11, %p5460_p13 }
 0x4cf   : > { %p5458_p8 = pneg %p5457_p4 }
 0x4d1   : > { %p5463_p1 = pnand %p5462_p5, %p5458_p8 }
 0x4d3   : > { %5466 = shalt.err (!%p5463_p1)
}
 0x4d4   : > { %s5526_s26 = smov 128   ;;  %s5527_s6 = smov 8  }
 0x4d5   : > { %5025 = dma.vmem_to_hbm [thread:$0]  (%p6061_p2), %s5991_s14, 4096, %s5989_s12, %s3965_s22, %s5526_s26, %s5526_s26, %s5527_s6  }
 0x4d6 PF: > { %s3993_s10 = sand.u32 1, %s5501_s18   ;;  %p6062_p12 = scmp.ne.s32.totalorder %s6048_s25, 0 }
 0x4d7   : > { %p6063_p7 = scmp.ge.s32.totalorder %s5513_s21, 2  ;;  %s3994_s9 = scalar_lea.sflag [#allocation6], %s3993_s10 }
 0x4d9   : > { %p5045_p9 = pnand %p6063_p7, %p6062_p12 }
 0x4db   : > { %p5046_p0 = pneg %p5045_p9 }
 0x4dd   : > { %5496 = dma.done.wait (%p5046_p0), %s3994_s9, 4096  }
 0x4de   : > { %5498 = vsyncadd (%p5046_p0), %s3994_s9, 4294963200  ;;  %p20_p10 = scmp.ge.s32.totalorder %s5658_s15, 4   ;;  %s6064_s18 = smov %s5505_s19 }
 0x4df   : > { %s6065_s19 = smov %s5509_s20  ;;  %s6066_s20 = smov %s5667_s17 }
 0x4e0   : > { %s6067_s21 = smov %s5658_s15  ;;  %22 = sbr.rel (!%p20_p10) target bundleno = 7 (0x7), region = 107 }
 0x4e5   :  { %3999 = vsyncpa [#allocation5], 1 }
 0x4e6   :  { %4001 = vsyncpa [#allocation5 + $0x1], 1 }
 0x4e7   :  { %4002 = vsyncpa [#allocation8], 1 }
 0x4e8   :  { %4003 = vsyncpa [#allocation11], 1 }
 0x4e9   :  { %4004 = vsyncpa [#allocation6], 1 }
 0x4ea   :  { %4006 = vsyncpa [#allocation6 + $0x1], 1 }

</bundles_post_ra>
